<compile_context>
chip_gen: v6e
topology: v6e:2x2x1
jax: 0.10.0
libtpu: 0.0.40
codegen_flags: <defaults>
</compile_context>

<pallas_src>
import math

import numpy as np
import jax
import jax.numpy as jnp
from jax.experimental import pallas as pl
from jax.experimental.pallas import tpu as pltpu


def _softplus(x):
    # numerically stable softplus = log(1 + exp(x))
    return jnp.logaddexp(x, jnp.zeros_like(x))


def _round_up(v, m):
    return ((v + m - 1) // m) * m


def _vmem_capacity_bytes():
    """Physical VMEM per TensorCore; conservative fallback if the query is unavailable."""
    try:
        info = pltpu.get_tpu_info()
        for name in ("vmem_capacity_bytes", "vmem_size_bytes", "vmem_bytes"):
            v = getattr(info, name, None)
            if v:
                return int(v)
    except Exception:
        pass
    return 64 << 20  # v7x-sized fallback (smallest of v5e/v6e/v7x)


# ----------------------------- kernels -----------------------------

def _make_fused_train_kernel(mxu_dtype, use_scratch):
    """y = x @ (wmu + softplus(wls)*weps).T + (bmu + softplus(bls)*beps), reparam in-kernel."""

    def kernel(x_ref, wmu_ref, wls_ref, weps_ref, bmu_ref, bls_ref, beps_ref,
               o_ref, *scratch):
        acc = scratch[0] if use_scratch else o_ref          # resident accumulator
        k = pl.program_id(2)

        @pl.when(k == 0)
        def _():
            acc[...] = jnp.zeros_like(acc)

        # Weight reparam in f32 on the VPU/EUP; cast to the MXU dtype only at the
        # matmul boundary, keep f32 accumulation. Weight stays in (out, in) layout:
        # contract the shared last (in_features) axis so no in-kernel transpose.
        w = wmu_ref[...] + _softplus(wls_ref[...]) * weps_ref[...]            # (tn, tk) f32
        acc[...] += jax.lax.dot_general(
            x_ref[...].astype(mxu_dtype), w.astype(mxu_dtype),
            dimension_numbers=(((1,), (1,)), ((), ())),
            preferred_element_type=jnp.float32)                               # (tm, tn)

        # Bias reparam + broadcast-add exactly once per output tile (last K step).
        @pl.when(k == pl.num_programs(2) - 1)
        def _():
            b = bmu_ref[...] + _softplus(bls_ref[...]) * beps_ref[...]        # (1, tn)
            o_ref[...] = (acc[...] + b).astype(o_ref.dtype)

    return kernel


def _make_linear_kernel(mxu_dtype, use_scratch, reparam_bias):
    """y = x @ w.T + bias. `w` is either weight_mu (eval) or the precomputed reparam weight."""

    def _accumulate(x_ref, w_ref, acc):
        @pl.when(pl.program_id(2) == 0)
        def _():
            acc[...] = jnp.zeros_like(acc)

        acc[...] += jax.lax.dot_general(
            x_ref[...].astype(mxu_dtype), w_ref[...].astype(mxu_dtype),
            dimension_numbers=(((1,), (1,)), ((), ())),
            preferred_element_type=jnp.float32)

    if reparam_bias:
        def kernel(x_ref, w_ref, bmu_ref, bls_ref, beps_ref, o_ref, *scratch):
            acc = scratch[0] if use_scratch else o_ref
            _accumulate(x_ref, w_ref, acc)

            @pl.when(pl.program_id(2) == pl.num_programs(2) - 1)
            def _():
                b = bmu_ref[...] + _softplus(bls_ref[...]) * beps_ref[...]
                o_ref[...] = (acc[...] + b).astype(o_ref.dtype)
    else:
        def kernel(x_ref, w_ref, bmu_ref, o_ref, *scratch):
            acc = scratch[0] if use_scratch else o_ref
            _accumulate(x_ref, w_ref, acc)

            @pl.when(pl.program_id(2) == pl.num_programs(2) - 1)
            def _():
                o_ref[...] = (acc[...] + bmu_ref[...]).astype(o_ref.dtype)

    return kernel


def _reparam_kernel(mu_ref, ls_ref, eps_ref, o_ref):
    """Elementwise: w = mu + softplus(logsigma) * epsilon, stored in the MXU dtype."""
    w = mu_ref[...] + _softplus(ls_ref[...]) * eps_ref[...]
    o_ref[...] = w.astype(o_ref.dtype)


# ----------------------------- wrapper -----------------------------

def bayes_backprop_linear(x, weight_mu, weight_logsigma, weight_epsilon,
                          bias_mu, bias_logsigma, bias_epsilon, *,
                          training=True, mxu_dtype=jnp.bfloat16,
                          tm_max=512, tn_max=512, tk_max=1024,
                          precompute_batch_tiles=4):
    """Pallas implementation of BayesBackpropLinear.forward."""
    batch, in_features = x.shape
    out_features = weight_mu.shape[0]
    dtype = x.dtype
    out_bytes = np.dtype(dtype).itemsize
    mxu_bytes = np.dtype(mxu_dtype).itemsize
    # f32 outputs accumulate directly into the resident output block; narrower output
    # dtypes keep a dedicated f32 accumulator scratch to preserve f32 accumulation.
    use_scratch = np.dtype(dtype) != np.dtype(np.float32)

    # --- generation-aware VMEM budget --------------------------------------------------
    vmem_cap = _vmem_capacity_bytes()
    budget = vmem_cap - ((16 << 20) if vmem_cap <= (64 << 20) else (28 << 20))

    # --- tile selection (sized for the worst-case stream count: 3 f32 weight streams) --
    n_w_sizing = 3 if training else 1
    tm = min(tm_max, _round_up(batch, 8))
    tn = min(tn_max, _round_up(out_features, 128))
    tk = min(tk_max, _round_up(in_features, 128))

    def _footprint(tm_, tn_, tk_):
        x_b = 2 * tm_ * tk_ * 4                       # double-buffered x tiles
        w_b = 2 * n_w_sizing * tn_ * tk_ * 4          # double-buffered weight tiles
        b_b = 2 * 3 * tn_ * 4                         # (tiny) bias tiles
        o_b = 2 * tm_ * tn_ * out_bytes               # output tile
        a_b = tm_ * tn_ * 4 if use_scratch else 0     # f32 accumulator scratch
        return x_b + w_b + b_b + o_b + a_b

    while _footprint(tm, tn, tk) > budget and tk > 128:
        tk = max(128, _round_up(tk // 2, 128))
    while _footprint(tm, tn, tk) > budget and tm > 8:
        tm = max(8, _round_up(tm // 2, 8))
    while _footprint(tm, tn, tk) > budget and tn > 128:
        tn = max(128, _round_up(tn // 2, 128))

    mp = _round_up(batch, tm)
    np_ = _round_up(out_features, tn)
    kp = _round_up(in_features, tk)

    # v7x megacore: keep at least 2 (i, j) "parallel" tiles whenever the problem allows.
    while ((mp // tm) * (np_ // tn) < 2 and tn > 128
           and _round_up(out_features, 128) > 128):
        tn = max(128, _round_up(tn // 2, 128))
        np_ = _round_up(out_features, tn)

    grid = (mp // tm, np_ // tn, kp // tk)
    m_tiles = grid[0]

    def pad2(a, rows, cols):
        if a.shape == (rows, cols):
            return a
        return jnp.pad(a, ((0, rows - a.shape[0]), (0, cols - a.shape[1])))

    def pad_bias(b):
        b = b.reshape(1, -1)
        if b.shape[1] != np_:
            b = jnp.pad(b, ((0, 0), (0, np_ - b.shape[1])))
        return b

    x_p = pad2(x, mp, kp)
    wmu_p = pad2(weight_mu, np_, kp)
    bmu_p = pad_bias(bias_mu)

    x_spec = pl.BlockSpec((tm, tk), lambda i, j, k: (i, k))
    w_spec = pl.BlockSpec((tn, tk), lambda i, j, k: (j, k))
    b_spec = pl.BlockSpec((1, tn), lambda i, j, k: (0, j))
    o_spec = pl.BlockSpec((tm, tn), lambda i, j, k: (i, j))

    scratch_shapes = [pltpu.VMEM((tm, tn), jnp.float32)] if use_scratch else []

    fp = _footprint(tm, tn, tk)
    vmem_limit = int(min(max(vmem_cap - (8 << 20), 32 << 20),
                         max(fp + (4 << 20), 32 << 20)))
    compiler_params = pltpu.CompilerParams(
        dimension_semantics=("parallel", "parallel", "arbitrary"),
        vmem_limit_bytes=vmem_limit)

    if training:
        wls_p = pad2(weight_logsigma, np_, kp)
        weps_p = pad2(weight_epsilon, np_, kp)
        bls_p = pad_bias(bias_logsigma)
        beps_p = pad_bias(bias_epsilon)

        if m_tiles >= precompute_batch_tiles:
            # ---- Precompute path: reparameterize the weight once (one pass over the three
            # f32 streams, bf16 result), then a plain matmul that streams only one bf16
            # weight tensor per batch tile. Removes the m_tiles-fold weight re-read. ----
            reparam_fp = 2 * (3 * tn * tk * 4 + tn * tk * mxu_bytes)
            w_p = pl.pallas_call(
                _reparam_kernel,
                out_shape=jax.ShapeDtypeStruct((np_, kp), mxu_dtype),
                grid_spec=pltpu.PrefetchScalarGridSpec(
                    num_scalar_prefetch=0,
                    grid=(np_ // tn, kp // tk),
                    in_specs=[pl.BlockSpec((tn, tk), lambda i, j: (i, j))] * 3,
                    out_specs=pl.BlockSpec((tn, tk), lambda i, j: (i, j))),
                compiler_params=pltpu.CompilerParams(
                    dimension_semantics=("parallel", "parallel"),
                    vmem_limit_bytes=int(min(max(vmem_cap - (8 << 20), 32 << 20),
                                             max(reparam_fp + (4 << 20), 32 << 20)))),
                cost_estimate=pl.CostEstimate(
                    flops=int(2 * np_ * kp),
                    transcendentals=int(np_ * kp),
                    bytes_accessed=int(3 * np_ * kp * 4 + np_ * kp * mxu_bytes)),
            )(wmu_p, wls_p, weps_p)

            out = pl.pallas_call(
                _make_linear_kernel(mxu_dtype, use_scratch, reparam_bias=True),
                out_shape=jax.ShapeDtypeStruct((mp, np_), dtype),
                grid_spec=pltpu.PrefetchScalarGridSpec(
                    num_scalar_prefetch=0,
                    grid=grid,
                    in_specs=[x_spec, w_spec, b_spec, b_spec, b_spec],
                    out_specs=o_spec,
                    scratch_shapes=scratch_shapes),
                compiler_params=compiler_params,
                cost_estimate=pl.CostEstimate(
                    flops=int(2 * mp * np_ * kp),
                    transcendentals=int(m_tiles * np_),
                    bytes_accessed=int(4 * mp * kp + m_tiles * np_ * kp * mxu_bytes
                                       + out_bytes * mp * np_ + m_tiles * 3 * np_ * 4)),
            )(x_p, w_p, bmu_p, bls_p, beps_p)
        else:
            # ---- Fused path: reparam recomputed per batch tile (cheap while m_tiles is
            # small); all three f32 weight streams are read per batch tile. ----
            out = pl.pallas_call(
                _make_fused_train_kernel(mxu_dtype, use_scratch),
                out_shape=jax.ShapeDtypeStruct((mp, np_), dtype),
                grid_spec=pltpu.PrefetchScalarGridSpec(
                    num_scalar_prefetch=0,
                    grid=grid,
                    in_specs=[x_spec, w_spec, w_spec, w_spec, b_spec, b_spec, b_spec],
                    out_specs=o_spec,
                    scratch_shapes=scratch_shapes),
                compiler_params=compiler_params,
                cost_estimate=pl.CostEstimate(
                    flops=int(2 * mp * np_ * kp + 2 * m_tiles * np_ * kp),
                    transcendentals=int(m_tiles * np_ * kp),
                    bytes_accessed=int(4 * mp * kp + m_tiles * 3 * np_ * kp * 4
                                       + out_bytes * mp * np_ + m_tiles * 3 * np_ * 4)),
            )(x_p, wmu_p, wls_p, weps_p, bmu_p, bls_p, beps_p)
    else:
        # Eval path: F.linear(x, weight_mu, bias_mu). No epsilon streams, no softplus.
        out = pl.pallas_call(
            _make_linear_kernel(mxu_dtype, use_scratch, reparam_bias=False),
            out_shape=jax.ShapeDtypeStruct((mp, np_), dtype),
            grid_spec=pltpu.PrefetchScalarGridSpec(
                num_scalar_prefetch=0,
                grid=grid,
                in_specs=[x_spec, w_spec, b_spec],
                out_specs=o_spec,
                scratch_shapes=scratch_shapes),
            compiler_params=compiler_params,
            cost_estimate=pl.CostEstimate(
                flops=int(2 * mp * np_ * kp),
                transcendentals=0,
                bytes_accessed=int(4 * mp * kp + m_tiles * np_ * kp * 4
                                   + out_bytes * mp * np_ + m_tiles * np_ * 4)),
        )(x_p, wmu_p, bmu_p)

    if (mp, np_) != (batch, out_features):
        out = out[:batch, :out_features]
    return out


# ----------------------------- init & reference -----------------------------

def init_params(key, in_features, out_features):
    """Deterministic parameter init mirroring reset_parameters()/reset_noise()."""
    k_wmu, k_weps, k_beps = jax.random.split(key, 3)
    mu_range = math.sqrt(3.0 / in_features)
    weight_mu = jax.random.uniform(
        k_wmu, (out_features, in_features), jnp.float32, -mu_range, mu_range)
    weight_logsigma = jnp.full((out_features, in_features), -3.0, jnp.float32)
    weight_epsilon = jax.random.normal(k_weps, (out_features, in_features), jnp.float32)
    # NOTE: PyTorch code does uniform_(-mu_range, -mu_range) -> constant -mu_range.
    bias_mu = jnp.full((out_features,), -mu_range, jnp.float32)
    bias_logsigma = jnp.full((out_features,), -3.0, jnp.float32)
    bias_epsilon = jax.random.normal(k_beps, (out_features,), jnp.float32)
    return (weight_mu, weight_logsigma, weight_epsilon,
            bias_mu, bias_logsigma, bias_epsilon)


def _reference(x, wmu, wls, weps, bmu, bls, beps, *, training=True,
               mxu_dtype=jnp.float32):
    """Reference with the same MXU-input rounding point as the kernel (f32 accumulation)."""
    if training:
        w = wmu + jax.nn.softplus(wls) * weps
        b = bmu + jax.nn.softplus(bls) * beps
    else:
        w, b = wmu, bmu
    y = jax.lax.dot_general(
        x.astype(mxu_dtype), w.astype(mxu_dtype),
        dimension_numbers=(((1,), (1,)), ((), ())),
        preferred_element_type=jnp.float32)
    return y + b


def _rel_err(a, b):
    return float(jnp.linalg.norm((a - b).astype(jnp.float32))
                 / (jnp.linalg.norm(b.astype(jnp.float32)) + 1e-12))


# ----------------------------- test -----------------------------

if __name__ == "__main__":
    key = jax.random.PRNGKey(0)
    k_x, k_p, k_x2, k_p2 = jax.random.split(key, 4)

    # Small but multi-tile shapes (exercise M, N, K grid axes, megacore split, padding).
    batch, in_features, out_features = 128, 384, 256
    x = jax.random.normal(k_x, (batch, in_features), jnp.float32)
    params = init_params(k_p, in_features, out_features)

    ref_bf16_train = _reference(x, *params, training=True, mxu_dtype=jnp.bfloat16)
    ref_f32_train = _reference(x, *params, training=True, mxu_dtype=jnp.float32)
    ref_bf16_eval = _reference(x, *params, training=False, mxu_dtype=jnp.bfloat16)
    ref_f32_eval = _reference(x, *params, training=False, mxu_dtype=jnp.float32)

    # 1) Training, fused-reparam path, default (large) tiles — grid (1, 2, 1).
    y = jax.block_until_ready(bayes_backprop_linear(x, *params, training=True))
    assert y.shape == (batch, out_features)
    assert jnp.allclose(y, ref_bf16_train, atol=2e-3, rtol=2e-3), "train fused (default tiles)"
    assert _rel_err(y, ref_f32_train) < 1e-2, "train fused vs f32 reference (accuracy budget)"

    # 2) Training, fused path, forced small tiles — grid (2, 2, 3) exercises K accumulation.
    y = jax.block_until_ready(bayes_backprop_linear(
        x, *params, training=True, tm_max=64, tn_max=128, tk_max=128))
    assert jnp.allclose(y, ref_bf16_train, atol=2e-3, rtol=2e-3), "train fused (small tiles)"

    # 3) Training, precomputed-weight path (forced) — one-pass reparam + bf16-weight matmul.
    y = jax.block_until_ready(bayes_backprop_linear(
        x, *params, training=True, tm_max=64, tn_max=128, tk_max=128,
        precompute_batch_tiles=1))
    assert jnp.allclose(y, ref_bf16_train, atol=2e-3, rtol=2e-3), "train precompute path"
    assert _rel_err(y, ref_f32_train) < 1e-2, "train precompute vs f32 reference"

    # 4) Eval path (mu-only linear).
    y = jax.block_until_ready(bayes_backprop_linear(
        x, *params, training=False, tm_max=64, tn_max=128, tk_max=128))
    assert jnp.allclose(y, ref_bf16_eval, atol=2e-3, rtol=2e-3), "eval path"
    assert _rel_err(y, ref_f32_eval) < 1e-2, "eval vs f32 reference"

    # 5) Unaligned tiny shapes: exercises the padding path (both modes).
    b2, i2, o2 = 5, 40, 24
    x2 = jax.random.normal(k_x2, (b2, i2), jnp.float32)
    params2 = init_params(k_p2, i2, o2)

    y2 = jax.block_until_ready(bayes_backprop_linear(x2, *params2, training=True))
    y2_ref = _reference(x2, *params2, training=True, mxu_dtype=jnp.bfloat16)
    assert y2.shape == (b2, o2)
    assert jnp.allclose(y2, y2_ref, atol=2e-3, rtol=2e-3), "train unaligned"

    y2e = jax.block_until_ready(bayes_backprop_linear(x2, *params2, training=False))
    y2e_ref = _reference(x2, *params2, training=False, mxu_dtype=jnp.bfloat16)
    assert jnp.allclose(y2e, y2e_ref, atol=2e-3, rtol=2e-3), "eval unaligned"

    print("KERNEL_OK")
</pallas_src>

<mosaic_0001>
module attributes {stable_mosaic.version = 11 : i64} {
  func.func @kernel(%arg0: i32, %arg1: i32, %arg2: i32, %arg3: memref<128x384xf32, #tpu.memory_space<vmem>>, %arg4: memref<128x384xf32, #tpu.memory_space<vmem>>, %arg5: memref<128x384xf32, #tpu.memory_space<vmem>>, %arg6: memref<128x384xf32, #tpu.memory_space<vmem>>, %arg7: memref<1x128xf32, #tpu.memory_space<vmem>>, %arg8: memref<1x128xf32, #tpu.memory_space<vmem>>, %arg9: memref<1x128xf32, #tpu.memory_space<vmem>>, %arg10: memref<128x128xf32, #tpu.memory_space<vmem>>) attributes {dimension_semantics = [#tpu.dimension_semantics<parallel>, #tpu.dimension_semantics<parallel>, #tpu.dimension_semantics<arbitrary>], iteration_bounds = array<i64: 1, 2, 1>, scalar_prefetch = 0 : i64, scratch_operands = 0 : i64, tpu.core_type = #tpu.core_type<tc>, window_params = [{transform_indices = @transform_0, window_bounds = array<i64: 128, 384>}, {transform_indices = @transform_1, window_bounds = array<i64: 128, 384>}, {transform_indices = @transform_2, window_bounds = array<i64: 128, 384>}, {transform_indices = @transform_3, window_bounds = array<i64: 128, 384>}, {transform_indices = @transform_4, window_bounds = array<i64: 1, 128>}, {transform_indices = @transform_5, window_bounds = array<i64: 1, 128>}, {transform_indices = @transform_6, window_bounds = array<i64: 1, 128>}, {transform_indices = @transform_7, window_bounds = array<i64: 128, 128>}]} {
    %c0_i32 = arith.constant 0 : i32
    %0 = arith.cmpi eq, %arg2, %c0_i32 : i32
    %1 = arith.extui %0 : i1 to i32
    %c0_i32_0 = arith.constant 0 : i32
    %2 = arith.cmpi ne, %1, %c0_i32_0 : i32
    scf.if %2 {
      %cst_16 = arith.constant 0.000000e+00 : f32
      %30 = vector.broadcast %cst_16 : f32 to vector<128x128xf32>
      %c0_17 = arith.constant 0 : index
      %c0_18 = arith.constant 0 : index
      %31 = vector.load %arg10[%c0_17, %c0_18] : memref<128x128xf32, #tpu.memory_space<vmem>>, vector<128x128xf32>
      tpu.vector_store %arg10[%c0_17, %c0_18], %30 {strides = array<i32>} : memref<128x128xf32, #tpu.memory_space<vmem>>, vector<128x128xf32>,
    } else {
    }
    %c0 = arith.constant 0 : index
    %c0_1 = arith.constant 0 : index
    %3 = vector.load %arg4[%c0, %c0_1] : memref<128x384xf32, #tpu.memory_space<vmem>>, vector<128x384xf32>
    %c0_2 = arith.constant 0 : index
    %c0_3 = arith.constant 0 : index
    %4 = vector.load %arg5[%c0_2, %c0_3] : memref<128x384xf32, #tpu.memory_space<vmem>>, vector<128x384xf32>
    %cst = arith.constant 0.000000e+00 : f32
    %5 = vector.broadcast %cst : f32 to vector<128x384xf32>
    %6 = arith.maximumf %4, %5 : vector<128x384xf32>
    %7 = arith.subf %4, %5 : vector<128x384xf32>
    %8 = arith.cmpf one, %7, %7 : vector<128x384xf32>
    %9 = arith.addf %4, %5 : vector<128x384xf32>
    %10 = math.absf %7 : vector<128x384xf32>
    %cst_4 = arith.constant 0.000000e+00 : f32
    %11 = vector.broadcast %cst_4 : f32 to vector<128x384xf32>
    %12 = arith.subf %11, %10 : vector<128x384xf32>
    %13 = math.exp %12 : vector<128x384xf32>
    %14 = math.log1p %13 : vector<128x384xf32>
    %15 = arith.addf %6, %14 : vector<128x384xf32>
    %16 = arith.select %8, %9, %15 : vector<128x384xi1>, vector<128x384xf32>
    %c0_5 = arith.constant 0 : index
    %c0_6 = arith.constant 0 : index
    %17 = vector.load %arg6[%c0_5, %c0_6] : memref<128x384xf32, #tpu.memory_space<vmem>>, vector<128x384xf32>
    %18 = arith.mulf %16, %17 : vector<128x384xf32>
    %19 = arith.addf %3, %18 : vector<128x384xf32>
    %c0_7 = arith.constant 0 : index
    %c0_8 = arith.constant 0 : index
    %20 = vector.load %arg10[%c0_7, %c0_8] : memref<128x128xf32, #tpu.memory_space<vmem>>, vector<128x128xf32>
    %c0_9 = arith.constant 0 : index
    %c0_10 = arith.constant 0 : index
    %21 = vector.load %arg3[%c0_9, %c0_10] : memref<128x384xf32, #tpu.memory_space<vmem>>, vector<128x384xf32>
    %22 = arith.truncf %21 : vector<128x384xf32> to vector<128x384xbf16>
    %23 = arith.truncf %19 : vector<128x384xf32> to vector<128x384xbf16>
    %cst_11 = arith.constant dense<0.000000e+00> : vector<128x128xf32>
    %24 = tpu.matmul %22, %23, %cst_11 {dimension_numbers = #tpu.dot_dimension_numbers<[1], [1], [0], [0], [0, 0, 1, 0], [], []>} : vector<128x384xbf16>, vector<128x384xbf16>, vector<128x128xf32> -> vector<128x128xf32>
    %25 = arith.addf %20, %24 : vector<128x128xf32>
    %c0_12 = arith.constant 0 : index
    %c0_13 = arith.constant 0 : index
    %26 = vector.load %arg10[%c0_12, %c0_13] : memref<128x128xf32, #tpu.memory_space<vmem>>, vector<128x128xf32>
    tpu.vector_store %arg10[%c0_12, %c0_13], %25 {strides = array<i32>} : memref<128x128xf32, #tpu.memory_space<vmem>>, vector<128x128xf32>,
    %c0_i32_14 = arith.constant 0 : i32
    %27 = arith.cmpi eq, %arg2, %c0_i32_14 : i32
    %28 = arith.extui %27 : i1 to i32
    %c0_i32_15 = arith.constant 0 : i32
    %29 = arith.cmpi ne, %28, %c0_i32_15 : i32
    scf.if %29 {
      %c0_16 = arith.constant 0 : index
      %c0_17 = arith.constant 0 : index
      %30 = vector.load %arg7[%c0_16, %c0_17] : memref<1x128xf32, #tpu.memory_space<vmem>>, vector<1x128xf32>
      %c0_18 = arith.constant 0 : index
      %c0_19 = arith.constant 0 : index
      %31 = vector.load %arg8[%c0_18, %c0_19] : memref<1x128xf32, #tpu.memory_space<vmem>>, vector<1x128xf32>
      %cst_20 = arith.constant 0.000000e+00 : f32
      %32 = vector.broadcast %cst_20 : f32 to vector<1x128xf32>
      %33 = arith.maximumf %31, %32 : vector<1x128xf32>
      %34 = arith.subf %31, %32 : vector<1x128xf32>
      %35 = arith.cmpf one, %34, %34 : vector<1x128xf32>
      %36 = arith.addf %31, %32 : vector<1x128xf32>
      %37 = math.absf %34 : vector<1x128xf32>
      %cst_21 = arith.constant 0.000000e+00 : f32
      %38 = vector.broadcast %cst_21 : f32 to vector<1x128xf32>
      %39 = arith.subf %38, %37 : vector<1x128xf32>
      %40 = math.exp %39 : vector<1x128xf32>
      %41 = math.log1p %40 : vector<1x128xf32>
      %42 = arith.addf %33, %41 : vector<1x128xf32>
      %43 = arith.select %35, %36, %42 : vector<1x128xi1>, vector<1x128xf32>
      %c0_22 = arith.constant 0 : index
      %c0_23 = arith.constant 0 : index
      %44 = vector.load %arg9[%c0_22, %c0_23] : memref<1x128xf32, #tpu.memory_space<vmem>>, vector<1x128xf32>
      %45 = arith.mulf %43, %44 : vector<1x128xf32>
      %46 = arith.addf %30, %45 : vector<1x128xf32>
      %c0_24 = arith.constant 0 : index
      %c0_25 = arith.constant 0 : index
      %47 = vector.load %arg10[%c0_24, %c0_25] : memref<128x128xf32, #tpu.memory_space<vmem>>, vector<128x128xf32>
      %48 = vector.broadcast %46 : vector<1x128xf32> to vector<128x128xf32>
      %49 = arith.addf %47, %48 : vector<128x128xf32>
      %c0_26 = arith.constant 0 : index
      %c0_27 = arith.constant 0 : index
      %50 = vector.load %arg10[%c0_26, %c0_27] : memref<128x128xf32, #tpu.memory_space<vmem>>, vector<128x128xf32>
      tpu.vector_store %arg10[%c0_26, %c0_27], %49 {strides = array<i32>} : memref<128x128xf32, #tpu.memory_space<vmem>>, vector<128x128xf32>,
    } else {
    }
    return
  }
  func.func @transform_0(%arg0: i32, %arg1: i32, %arg2: i32) -> (i32, i32) {
    %c0_i32 = arith.constant 0 : i32
    return %arg0, %arg2 : i32, i32
  }
  func.func @transform_1(%arg0: i32, %arg1: i32, %arg2: i32) -> (i32, i32) {
    %c0_i32 = arith.constant 0 : i32
    return %arg1, %arg2 : i32, i32
  }
  func.func @transform_2(%arg0: i32, %arg1: i32, %arg2: i32) -> (i32, i32) {
    %c0_i32 = arith.constant 0 : i32
    return %arg1, %arg2 : i32, i32
  }
  func.func @transform_3(%arg0: i32, %arg1: i32, %arg2: i32) -> (i32, i32) {
    %c0_i32 = arith.constant 0 : i32
    return %arg1, %arg2 : i32, i32
  }
  func.func @transform_4(%arg0: i32, %arg1: i32, %arg2: i32) -> (i32, i32) {
    %c0_i32 = arith.constant 0 : i32
    %c0_i32_0 = arith.constant 0 : i32
    return %c0_i32, %arg1 : i32, i32
  }
  func.func @transform_5(%arg0: i32, %arg1: i32, %arg2: i32) -> (i32, i32) {
    %c0_i32 = arith.constant 0 : i32
    %c0_i32_0 = arith.constant 0 : i32
    return %c0_i32, %arg1 : i32, i32
  }
  func.func @transform_6(%arg0: i32, %arg1: i32, %arg2: i32) -> (i32, i32) {
    %c0_i32 = arith.constant 0 : i32
    %c0_i32_0 = arith.constant 0 : i32
    return %c0_i32, %arg1 : i32, i32
  }
  func.func @transform_7(%arg0: i32, %arg1: i32, %arg2: i32) -> (i32, i32) {
    %c0_i32 = arith.constant 0 : i32
    return %arg0, %arg1 : i32, i32
  }
}

</mosaic_0001>

<bundles_post_ra>
// kernel: tpu_custom_call.1
= control target key start
LH: loop header
LB: loop body
LE: loop exit
PB: predicated region body
PF: predicated region fallthrough
CT: control target
= control target key end

     0   :  { %s4262_s0 = inlined_call_operand.hbm [shape: f32[128,384], index: 0, kind: input, shape index: {}]   ;;  %s4263_s1 = inlined_call_operand.hbm [shape: f32[256,384], index: 1, kind: input, shape index: {}]   ;;  %s4264_s2 = inlined_call_operand.hbm [shape: f32[256,384], index: 2, kind: input, shape index: {}]   ;;  %s4265_s3 = inlined_call_operand.hbm [shape: f32[256,384], index: 3, kind: input, shape index: {}]   ;;  %s4266_s4 = inlined_call_operand.vmem [shape: f32[1,256], index: 4, kind: input, shape index: {}]   ;;  %s4267_s5 = inlined_call_operand.vmem [shape: f32[1,256], index: 5, kind: input, shape index: {}]   ;;  %s4268_s6 = inlined_call_operand.vmem [shape: f32[1,256], index: 6, kind: input, shape index: {}]   ;;  %s4269_s7 = inlined_call_operand.hbm [shape: f32[128,256], index: 7, kind: output, shape index: {}]  }
   0x1   :  { %4282 = sst [smem:[#allocation20_spill]] %s4263_s1 }
   0x2   :  { %4283 = sst [smem:[#allocation21_spill]] %s4264_s2 }
   0x3   :  { %12 = vsyncpa [#allocation3], 0 }
   0x4   :  { %13 = vsyncpa [#allocation6], 0 }
   0x5   :  { %15 = vsyncpa [#allocation6 + $0x1], 0 }
   0x6   :  { %16 = vsyncpa [#allocation9], 0 }
   0x7   :  { %18 = vsyncpa [#allocation9 + $0x1], 0 }
   0x8   :  { %19 = vsyncpa [#allocation4], 0 }
   0x9   :  { %21 = vsyncpa [#allocation4 + $0x1], 0  ;;  %s2841_s24 = smov 0   ;;  %s2843_s25 = smov 0  }
   0xa   :  { %s2845_s26 = smov 0   ;;  %s2847_s27 = smov 0  }
   0xb   :  { %s2849_s28 = smov 0   ;;  %s2851_s29 = smov 0  }
   0xc LB: > { %4284 = sst [smem:[#allocation15_spill]] %s2785_s28  ;;  %s42_s30 = sadd.s32 1, %s2785_s28  ;;  %s2789_s29 = sphi %s2851_s29, %s27_s29   ;;  %s2785_s28 = sphi %s2849_s28, %s4395_s28   ;;  %s2781_s27 = sphi %s2847_s27, %s4394_s27   ;;  %s2777_s26 = sphi %s2845_s26, %s4398_s26   ;;  %s2773_s25 = sphi %s2843_s25, %s4397_s25   ;;  %s2769_s24 = sphi %s2841_s24, %s4396_s24  }
   0xd   : > { %4285 = sst [smem:[#allocation16_spill]] %s2789_s29  ;;  %s83_s8 = sadd.s32 1, %s2777_s26 }
   0xe   : > { %p44_p0 = scmp.ge.s32.totalorder %s42_s30, 2  ;;  %p90_p1 = scmp.ne.s32.totalorder %s2777_s26, %s2773_s25 }
   0xf   : > { %p91_p2 = scmp.eq.s32.totalorder %s2789_s29, 0  ;;  %p2337_p6 = scmp.lt.s32.totalorder %s2789_s29, 2 }
  0x10   : > { %s4400_s30 = smov (%p44_p0, %s42_s30), 0  ;;  %s301_s10 = sand.u32 1, %s2789_s29  }
  0x11   : > { %4286 = sst [smem:[#allocation17_spill]] %s4400_s30  ;;  %p92_p3 = por %p91_p2, %p90_p1 }
  0x12   : > { %s78_s9 = ssub.s32 %s2785_s28, %s4400_s30  ;;  %s4270_s11 = sand.u32 1, %s2777_s26  }
  0x13   : > { %p81_p5 = scmp.eq.s32.totalorder %s78_s9, 0  ;;  %s2892_s13 = smul.u32 384, %s4270_s11 }
  0x14   : > { %s2895_s14 = smul.u32 6144, %s2785_s28  ;;  %p2897_p7 = pnand %p2337_p6, %p92_p3 }
  0x15   : > { %s2888_s12 = scalar_select %p81_p5, %s2777_s26, %s83_s8  }
  0x16   : > { %s4289_s1 = sld [smem:[#allocation20_spill]]  ;;  %s305_s19 = scalar_lea.vmem [#allocation5], %s2892_s13 }
  0x17   : > { %4287 = sst [smem:[#allocation18_spill]] %s2888_s12  ;;  %s315_s20 = sshll.u32 %s305_s19, 4  ;;  %s316_s20 = int_to_ptr.vmem [resolvable:$true] %s315_s20 }
  0x18   : > { %s2906_s21 = scalar_lea.sflag [#allocation6], %s301_s10  ;;  %p2593_p8 = pneg %p2897_p7 }
  0x19   : > { %s2604_s22 = scalar_lea.vmem %s316_s20, 6144  ;;  %s2791_s23 = smov [#allocation5]  }
  0x1a   : > { %p2605_p9 = scmp.ne.s32.totalorder %s316_s20, %s2604_s22  ;;  %s2609_s8 = sshll.u32 %s2791_s23, 4  ;;  %s2610_s8 = int_to_ptr.vmem [resolvable:$false] %s2609_s8 }
  0x1b   : > { %s2611_s9 = scalar_lea.vmem %s2610_s8, 12288  ;;  %p2612_p12 = scmp.lt.s32.totalorder %s316_s20, %s2610_s8 }
  0x1c   : > { %s314_s18 = scalar_lea.hbm %s4289_s1, %s2895_s14  ;;  %p2607_p10 = pnand %p2605_p9, %p2593_p8 }
  0x1d   : > { %p2613_p13 = scmp.lt.s32.totalorder %s2611_s9, %s2604_s22 }
  0x1e   : > { %p2608_p11 = pneg %p2607_p10 }
  0x1f   : > { %p2614_p0 = por %p2613_p13, %p2612_p12 }
  0x21   : > { %p2615_p2 = pnand %p2614_p0, %p2608_p11 }
  0x23   : > { %2618 = shalt.err (!%p2615_p2)
}
  0x24   : > { %s4271_s16 = smov 384   ;;  %s4273_s10 = smov 24  }
  0x25   : > { %2325 = dma.hbm_to_vmem [thread:$0]  (!%p2897_p7), %s314_s18, 6144, %s316_s20, %s2906_s21, %s4271_s16, %s4271_s16, %s4273_s10  }
  0x26   : > { %s2920_s17 = sadd.s32 4294967295, %s2789_s29   ;;  %s2231_s19 = sadd.s32 4294967294, %s2789_s29  }
  0x27   : > { %p96_p3 = scmp.ne.s32.totalorder %s2773_s25, %s2769_s24  ;;  %p4280_p5 = scmp.eq.s32.totalorder %s2920_s17, 0 }
  0x28   : > { %p256_p6 = scmp.eq.s32.totalorder %s2920_s17, 1  ;;  %p262_p9 = scmp.eq.s32.totalorder %s2231_s19, 1 }
  0x29   : > { %p2232_p10 = scmp.ge.s32.totalorder %s2789_s29, 1  ;;  %p2930_p11 = por %p4280_p5, %p96_p3 }
  0x2a   : > { %p2937_p12 = por %p256_p6, %p90_p1  ;;  %p2941_p13 = por %p262_p9, %p96_p3 }
  0x2b   : > { %p269_p0 = scmp.lt.s32.totalorder %s2789_s29, 3  ;;  %s2794_s8 = smov [#allocation2]  }
  0x2c   : > { %s4291_s18 = scalar_select %p2937_p12, 1, 0 }
  0x2d   : > { %s4292_s20 = scalar_select %p2941_p13, 1, 0 }
  0x2e   : > { %p2946_p2 = pnand %p2232_p10, %p269_p0  ;;  %s287_s9 = sshll.u32 %s2794_s8, 4  ;;  %s2950_s9 = int_to_ptr.vmem [resolvable:$true] %s287_s9 }
  0x2f   : > { %4293 = sst [smem:[#allocation19_spill]] %s4292_s20  ;;  %s329_s10 = scalar_lea.vmem [#allocation7], %s2892_s13 }
  0x30   : > { %p2318_p4 = pneg %p2946_p2  ;;  %s4295_s2 = sld [smem:[#allocation21_spill]] }
  0x31   : > { %s339_s1 = sshll.u32 %s329_s10, 4  ;;  %s2795_s8 = smov [#allocation7]   ;;  %s340_s1 = int_to_ptr.vmem [resolvable:$true] %s339_s1 }
  0x32   : > { %p2961_p1 = pnand %p2318_p4, %p4280_p5  ;;  %s2632_s28 = scalar_lea.vmem %s340_s1, 6144 }
  0x33   : > { %p2633_p3 = scmp.ne.s32.totalorder %s340_s1, %s2632_s28  ;;  %s2637_s12 = sshll.u32 %s2795_s8, 4  ;;  %s2638_s12 = int_to_ptr.vmem [resolvable:$false] %s2637_s12 }
  0x34   : > { %s2639_s29 = scalar_lea.vmem %s2638_s12, 12288  ;;  %p2640_p10 = scmp.lt.s32.totalorder %s340_s1, %s2638_s12 }
  0x35   : > { %p2635_p6 = pnand %p2633_p3, %p2593_p8  ;;  %p2641_p0 = scmp.lt.s32.totalorder %s2639_s29, %s2632_s28 }
  0x36   : > { %s338_s16 = scalar_lea.hbm %s4295_s2, %s2895_s14 }
  0x37   : > { %p2636_p9 = pneg %p2635_p6  ;;  %p2642_p13 = por %p2641_p0, %p2640_p10 }
  0x39   : > { %p2643_p12 = pnand %p2642_p13, %p2636_p9 }
  0x3b   : > { %2646 = shalt.err (!%p2643_p12)
}
  0x3c   : > { %s4297_s11 = smov 24   ;;  %s4298_s10 = smov 384  }
  0x3d   : > { %2328 = dma.hbm_to_vmem [thread:$0]  (!%p2897_p7), %s338_s16, 6144, %s340_s1, %s2906_s21, %s4298_s10, %s4298_s10, %s4297_s11  }
  0x3e   : > { %p2649_p4 = pneg %p2961_p1  ;;  %s2658_s19 = scalar_lea.vmem %s2950_s9, 6144 }
  0x3f   : > { %p2659_p3 = scmp.ne.s32.totalorder %s2950_s9, %s2658_s19  ;;  %p2666_p13 = scmp.lt.s32.totalorder %s2950_s9, %s2950_s9 }
  0x40   : > { %p2667_p12 = scmp.lt.s32.totalorder %s2658_s19, %s2658_s19 }
  0x41   : > { %p2661_p6 = pnand %p2659_p3, %p2649_p4 }
  0x42   : > { %p2668_p9 = por %p2667_p12, %p2666_p13 }
  0x43   : > { %p2662_p5 = pneg %p2661_p6 }
  0x45   : > { %p2669_p10 = pnand %p2668_p9, %p2662_p5 }
  0x47   : > { %2672 = shalt.err (!%p2669_p10)
}
  0x48   : > { %2321 = dma.hbm_to_vmem [thread:$0]  (!%p2961_p1), %s4262_s0, 6144, %s2950_s9, [#allocation3], %s4298_s10, %s4298_s10, %s4297_s11  }
  0x49   : > { %s362_s21 = scalar_lea.hbm %s4265_s3, %s2895_s14  ;;  %s353_s16 = scalar_lea.vmem [#allocation8], %s2892_s13 }
  0x4a   : > { %s363_s8 = sshll.u32 %s353_s16, 4  ;;  %s4299_s30 = sand.u32 1, %s2777_s26   ;;  %s364_s8 = int_to_ptr.vmem [resolvable:$true] %s363_s8 }
  0x4b   : > { %s350_s19 = scalar_lea.sflag [#allocation9], %s4299_s30  ;;  %s2686_s2 = scalar_lea.vmem %s364_s8, 6144 }
  0x4c   : > { %p2687_p5 = scmp.ne.s32.totalorder %s364_s8, %s2686_s2  ;;  %s2796_s28 = smov [#allocation8]  }
  0x4d   : > { %s2691_s1 = sshll.u32 %s2796_s28, 4  ;;  %s2692_s1 = int_to_ptr.vmem [resolvable:$false] %s2691_s1 }
  0x4e   : > { %p2689_p0 = pnand %p2687_p5, %p2593_p8  ;;  %s2693_s20 = scalar_lea.vmem %s2692_s1, 12288 }
  0x4f   : > { %p2694_p1 = scmp.lt.s32.totalorder %s364_s8, %s2692_s1  ;;  %p2695_p3 = scmp.lt.s32.totalorder %s2693_s20, %s2686_s2 }
  0x50   : > { %p2690_p4 = pneg %p2689_p0 }
  0x51   : > { %p2696_p6 = por %p2695_p3, %p2694_p1 }
  0x53   : > { %p2697_p13 = pnand %p2696_p6, %p2690_p4 }
  0x55   : > { %2700 = shalt.err (!%p2697_p13)
}
  0x56   : > { %2331 = dma.hbm_to_vmem [thread:$0]  (!%p2897_p7), %s362_s21, 6144, %s364_s8, %s350_s19, %s4298_s10, %s4298_s10, %s4297_s11  }
  0x57   : > { %393 = sbr.rel (%p2946_p2) target bundleno = 636 (0x27c), region = 48  ;;  %p4300_p8 = scmp.eq.s32.totalorder (!%p2946_p2), %s2920_s17, 0 }
  0x5c   : > { %2752 = dma.done.wait (%p4300_p8), [#allocation3], 6144   ;;  %p4301_p12 = pmov %p4300_p8 }
  0x5d   : > { %s399_s2 = sand.u32 1, %s2920_s17   ;;  %s3012_s13 = sand.u32 1, %s2773_s25  }
  0x5e   : > { %2754 = vsyncadd (%p4301_p12), [#allocation3], 4294961152  ;;  %s2305_s14 = smul.u32 384, %s3012_s13  ;;  %s400_s15 = scalar_lea.sflag [#allocation6], %s399_s2 }
  0x60   : > { %s3015_s20 = scalar_lea.vmem [#allocation5], %s2305_s14 }
  0x61   : > { %2756 = dma.done.wait (%p2930_p11), %s400_s15, 12288  }
  0x62   : > { %2758 = vsyncadd (%p2930_p11), %s400_s15, 4294955008  ;;  %s3021_s23 = scalar_lea.vmem [#allocation7], %s2305_s14  ;;  %s418_s9 = scalar_lea.sflag [#allocation9], %s3012_s13 }
  0x63   : > { %s3024_s11 = scalar_lea.vmem [#allocation8], %s2305_s14 }
  0x64   : > { %2760 = dma.done.wait (%p2930_p11), %s418_s9, 6144  }
  0x65   : > { %2762 = vsyncadd (%p2930_p11), %s418_s9, 4294961152  ;;  %v3031_v0 = vld [vmem:[%s3021_s23 + $0x158] sm:$0xff]  ;;  %v3034_v1 = vld [vmem:[%s3021_s23 + $0x170] sm:$0xff]  ;;  %p479_p7 = scmp.lt.s32.totalorder %s2781_s27, 1  ;;  %s2246_s28 = sshll.u32 %s3012_s13, 7 }
  0x66   : > { %v793_v2 = vand.u32 2147483647, %v3031_v0  ;;  %v796_v3 = vand.u32 2147483647, %v3034_v1  ;;  %v3039_v4 = vld [vmem:[%s3021_s23 + $0x160] sm:$0xff]  ;;  %v3042_v6 = vld [vmem:[%s3021_s23 + $0x178] sm:$0xff]  ;;  %vm697_vm3 = vcmp.ne.f32.partialorder %v3031_v0, %v3031_v0  ;;  %vm700_vm4 = vcmp.ne.f32.partialorder %v3034_v1, %v3034_v1 }
  0x67   : > { %v794_v7 = vand.u32 2147483647, %v3039_v4  ;;  %v797_v9 = vand.u32 2147483647, %v3042_v6  ;;  %v3047_v12 = vld [vmem:[%s3021_s23 + $0x150] sm:$0xff]  ;;  %v3050_v13 = vld [vmem:[%s3021_s23 + $0x168] sm:$0xff]  ;;  %vm698_vm6 = vcmp.ne.f32.partialorder %v3039_v4, %v3039_v4  ;;  %vm701_vm7 = vcmp.ne.f32.partialorder %v3042_v6, %v3042_v6 }
  0x68   : > { %v841_v5 = vsub.f32 0.0, %v793_v2  ;;  %v844_v8 = vsub.f32 0.0, %v796_v3  ;;  %v792_v18 = vand.u32 2147483647, %v3047_v12  ;;  %v795_v19 = vand.u32 2147483647, %v3050_v13 }
  0x69   : > { %v842_v11 = vsub.f32 0.0, %v794_v7  ;;  %v845_v15 = vsub.f32 0.0, %v797_v9  ;;  %v3055_v20 = vld [vmem:[%s3021_s23 + $0x128] sm:$0xff]  ;;  %v3058_v21 = vld [vmem:[%s3021_s23 + $0x140] sm:$0xff]  ;;  %v3062_v25 = vld [vmem:[%s3021_s23 + $0x130] sm:$0xff]  ;;  %v649_v39 = vmax.f32 %v3031_v0, 0.0  ;;  %vm696_vm10 = vcmp.ne.f32.partialorder %v3047_v12, %v3047_v12 }
  0x6a   : > { %v932_v10 = vmul.f32 1.442695, %v841_v5  ;;  %v938_v14 = vmul.f32 1.442695, %v844_v8  ;;  %v840_v22 = vsub.f32 0.0, %v792_v18  ;;  %v843_v23 = vsub.f32 0.0, %v795_v19 }
  0x6b   : > { %v934_v16 = vmul.f32 1.442695, %v842_v11  ;;  %v940_v17 = vmul.f32 1.442695, %v845_v15  ;;  %v787_v24 = vand.u32 2147483647, %v3055_v20  ;;  %vm699_vm11 = vcmp.ne.f32.partialorder %v3050_v13, %v3050_v13 }
  0x6c   : > { %2395 = vpow2.f32 %v932_v10  ;;  %v3065_v26 = vld [vmem:[%s3021_s23 + $0x148] sm:$0xff]  ;;  %v930_v27 = vmul.f32 1.442695, %v840_v22  ;;  %v936_v28 = vmul.f32 1.442695, %v843_v23  ;;  %v3071_v38 = vld [vmem:[%s3021_s23 + $0x120] sm:$0xff]  ;;  %vm691_vm14 = vcmp.ne.f32.partialorder %v3055_v20, %v3055_v20 }
  0x6d   : > { %2397 = vpow2.f32 %v938_v14  ;;  %v790_v29 = vand.u32 2147483647, %v3058_v21  ;;  %v835_v30 = vsub.f32 0.0, %v787_v24  ;;  %v788_v32 = vand.u32 2147483647, %v3062_v25  ;;  %v3075_v42 = vld [vmem:[%s3021_s23 + $0x138] sm:$0xff] }
  0x6e   : > { %2399 = vpow2.f32 %v934_v16  ;;  %v791_v33 = vand.u32 2147483647, %v3065_v26  ;;  %v652_v43 = vmax.f32 %v3034_v1, 0.0  ;;  %v650_v44 = vmax.f32 %v3039_v4, 0.0  ;;  %v3089_v2 = vld [vmem:[%s3021_s23 + $0xf8] sm:$0xff]  ;;  %v3092_v8 = vld [vmem:[%s3021_s23 + $0x110] sm:$0xff] }
  0x6f   : > { %2401 = vpow2.f32 %v940_v17  ;;  %v838_v31 = vsub.f32 0.0, %v790_v29  ;;  %v920_v34 = vmul.f32 1.442695, %v835_v30  ;;  %v836_v36 = vsub.f32 0.0, %v788_v32  ;;  %s4156_s17 = scalar_select %p479_p7, %s2781_s27, 1 }
  0x70   : > { %2403 = vpow2.f32 %v930_v27  ;;  %v839_v37 = vsub.f32 0.0, %v791_v33  ;;  %v653_v45 = vmax.f32 %v3042_v6, 0.0  ;;  %v786_v46 = vand.u32 2147483647, %v3071_v38  ;;  %s4174_s1 = scalar_lea.vmem [#allocation10], %s2246_s28  ;;  %s2248_s2 = sshll.u32 %s2781_s27, 7 }
  0x71   : > { %2405 = vpow2.f32 %v936_v28  ;;  %v926_v35 = vmul.f32 1.442695, %v838_v31  ;;  %v922_v40 = vmul.f32 1.442695, %v836_v36  ;;  %v648_v48 = vmax.f32 %v3047_v12, 0.0  ;;  %s484_s29 = scalar_lea.vmem %s4267_s5, %s4156_s17  ;;  %s487_s16 = scalar_lea.vmem %s4268_s6, %s4156_s17 }
  0x72   : > { %2407 = vpow2.f32 %v920_v34  ;;  %v928_v41 = vmul.f32 1.442695, %v839_v37  ;;  %v651_v49 = vmax.f32 %v3050_v13, 0.0  ;;  %v643_v50 = vmax.f32 %v3055_v20, 0.0  ;;  %s481_s19 = scalar_lea.vmem %s4266_s4, %s4156_s17  ;;  %s2048_s14 = sshll.u32 %s4174_s1, 4  ;;  %s4212_s14 = int_to_ptr.vmem [resolvable:$true] %s2048_s14 }
  0x73   : > { %2409 = vpow2.f32 %v926_v35  ;;  %v789_v54 = vand.u32 2147483647, %v3075_v42  ;;  %v646_v58 = vmax.f32 %v3058_v21, 0.0  ;;  %v644_v59 = vmax.f32 %v3062_v25, 0.0  ;;  %s2033_s27 = scalar_lea.sflag [#allocation4], %s3012_s13  ;;  %s2701_s9 = scalar_lea.vmem %s4212_s14, 2048 }
  0x74   : > { %2411 = vpow2.f32 %v922_v40  ;;  %v647_v62 = vmax.f32 %v3065_v26, 0.0  ;;  %v834_v63 = vsub.f32 0.0, %v786_v46  ;;  %v781_v17 = vand.u32 2147483647, %v3089_v2  ;;  %p2702_p11 = scmp.ne.s32.totalorder %s4212_s14, %s2701_s9  ;;  %p4388_p2 = scmp.ne.s32.totalorder %s4291_s18, 0 }
  0x75   : > { %2413 = vpow2.f32 %v928_v41  ;;  %v837_v11 = vsub.f32 0.0, %v789_v54  ;;  %v784_v23 = vand.u32 2147483647, %v3092_v8  ;;  %vm694_vm15 = vcmp.ne.f32.partialorder %v3058_v21, %v3058_v21 }
  0x76   : > { %v3095_v22 = vmul.f32 1.442695, %v834_v63  ;;  %p2703_p9 = pnand %p2702_p11, %p4388_p2 }
  0x77   : > { %v3114_v41 = vmul.f32 1.442695, %v837_v11 }
  0x78   : > { %p2704_p10 = pneg %p2703_p9 }
  0x79   : > { %v2396_v47 = vpop.eup %2395 }
  0x7a   : > { %v2398_v51 = vpop.eup %2397  ;;  %v1329_v52 = vadd.f32 1.0, %v2396_v47  ;;  %v1332_v53 = vmul.f32 -0.5, %v2396_v47  ;;  %v1335_v5 = vand.u32 2147483647, %v2396_v47 }
  0x7b   : > { %v2400_v55 = vpop.eup %2399  ;;  %v1356_v56 = vadd.f32 1.0, %v2398_v51  ;;  %v1359_v57 = vmul.f32 -0.5, %v2398_v51  ;;  %v1362_v9 = vand.u32 2147483647, %v2398_v51 }
  0x7c   : > { %v2402_v60 = vpop.eup %2401  ;;  %2415 = vlog2.f32 %v1329_v52  ;;  %v1338_v61 = vadd.f32 1.0, %v2400_v55  ;;  %v1333_v3 = vadd.f32 1.0, %v1332_v53  ;;  %v1341_v7 = vmul.f32 -0.5, %v2400_v55 }
  0x7d   : > { %2417 = vlog2.f32 %v1356_v56  ;;  %v1365_v10 = vadd.f32 1.0, %v2402_v60  ;;  %v1360_v14 = vadd.f32 1.0, %v1359_v57  ;;  %v1344_v15 = vand.u32 2147483647, %v2400_v55  ;;  %v2404_v18 = vpop.eup %2403 }
  0x7e   : > { %2419 = vlog2.f32 %v1338_v61  ;;  %v1368_v16 = vmul.f32 -0.5, %v2402_v60  ;;  %v1342_v19 = vadd.f32 1.0, %v1341_v7  ;;  %v2406_v24 = vpop.eup %2405  ;;  %v3098_v27 = vmul.f32 %v2396_v47, %v1333_v3 }
  0x7f   : > { %2421 = vlog2.f32 %v1365_v10  ;;  %vm3100_vm0 = vcmp.lt.f32.partialorder %v1335_v5, 0.0004427343  ;;  %v1371_v29 = vand.u32 2147483647, %v2402_v60  ;;  %v1320_v30 = vadd.f32 1.0, %v2404_v18  ;;  %v2408_v36 = vpop.eup %2407 }
  0x80   : > { %vm3104_vm1 = vcmp.lt.f32.partialorder %v1362_v9, 0.0004427343  ;;  %v1369_v32 = vadd.f32 1.0, %v1368_v16  ;;  %v1323_v33 = vmul.f32 -0.5, %v2404_v18  ;;  %v1347_v34 = vadd.f32 1.0, %v2406_v24  ;;  %v2410_v46 = vpop.eup %2409 }
  0x81   : > { %v1350_v35 = vmul.f32 -0.5, %v2406_v24  ;;  %v3108_v37 = vmul.f32 %v2398_v51, %v1360_v14  ;;  %vm3110_vm2 = vcmp.lt.f32.partialorder %v1344_v15, 0.0004427343  ;;  %2423 = vlog2.f32 %v1320_v30  ;;  %v3128_v63 = vpop.eup %2411 }
  0x82   : > { %v3118_v47 = vmul.f32 %v2400_v55, %v1342_v19  ;;  %v1326_v52 = vand.u32 2147483647, %v2404_v18  ;;  %2425 = vlog2.f32 %v1347_v34  ;;  %v3120_v53 = vsub.f32 0.0, %v781_v17  ;;  %v3134_v9 = vpop.eup %2413 }
  0x83   : > { %vm3124_vm5 = vcmp.lt.f32.partialorder %v1371_v29, 0.0004427343  ;;  %v1324_v54 = vadd.f32 1.0, %v1323_v33  ;;  %v1353_v56 = vand.u32 2147483647, %v2406_v24  ;;  %v1275_v57 = vadd.f32 1.0, %v2408_v36 }
  0x84   : > { %v1278_v61 = vmul.f32 -0.5, %v2408_v36  ;;  %v3132_v55 = vmul.f32 %v2402_v60, %v1369_v32  ;;  %v1351_v3 = vadd.f32 1.0, %v1350_v35  ;;  %v1302_v5 = vadd.f32 1.0, %v2410_v46 }
  0x85   : > { %v1305_v7 = vmul.f32 -0.5, %v2410_v46  ;;  %2427 = vlog2.f32 %v1275_v57  ;;  %v1281_v11 = vand.u32 2147483647, %v2408_v36  ;;  %v3136_v14 = vsub.f32 0.0, %v784_v23 }
  0x86   : > { %v1279_v10 = vadd.f32 1.0, %v1278_v61  ;;  %vm3140_vm8 = vcmp.lt.f32.partialorder %v1326_v52, 0.0004427343  ;;  %2429 = vlog2.f32 %v1302_v5  ;;  %v1284_v16 = vadd.f32 1.0, %v3128_v63 }
  0x87   : > { %v1306_v60 = vadd.f32 1.0, %v1305_v7  ;;  %v1287_v17 = vmul.f32 -0.5, %v3128_v63  ;;  %v3146_v29 = vmul.f32 %v2404_v18, %v1324_v54  ;;  %vm3148_vm9 = vcmp.lt.f32.partialorder %v1353_v56, 0.0004427343 }
  0x88   : > { %v1308_v23 = vand.u32 2147483647, %v2410_v46  ;;  %v1311_v32 = vadd.f32 1.0, %v3134_v9  ;;  %v3153_v35 = vmul.f32 %v2406_v24, %v1351_v3  ;;  %2431 = vlog2.f32 %v1284_v16 }
  0x89   : > { %v2416_v19 = vpop.eup %2415  ;;  %v1288_v52 = vadd.f32 1.0, %v1287_v17  ;;  %v3157_v18 = vmul.f32 %v2408_v36, %v1279_v10  ;;  %v1314_v54 = vmul.f32 -0.5, %v3134_v9  ;;  %vm3165_vm12 = vcmp.lt.f32.partialorder %v1281_v11, 0.0004427343  ;;  %v1513_v10 = vld [vmem:[%s3024_s11 + $0x158] sm:$0xff] }
  0x8a   : > { %v2418_v33 = vpop.eup %2417  ;;  %v1331_v34 = vmul.f32 0.6931472, %v2416_v19  ;;  %2433 = vlog2.f32 %v1311_v32  ;;  %v3169_v5 = vmul.f32 %v2410_v46, %v1306_v60  ;;  %v1290_v36 = vand.u32 2147483647, %v3128_v63  ;;  %v1516_v60 = vld [vmem:[%s3024_s11 + $0x170] sm:$0xff]  ;;  %v553_v17 = vld [vmem:[%s3015_s20 + $0x158] sm:$0xff] }
  0x8b   : > { %v2420_v57 = vpop.eup %2419  ;;  %v1358_v61 = vmul.f32 0.6931472, %v2418_v33  ;;  %vm3178_vm13 = vcmp.lt.f32.partialorder %v1308_v23, 0.0004427343  ;;  %v3183_v46 = vmul.f32 %v3128_v63, %v1288_v52  ;;  %2435 = vpow2.f32 %v3095_v22  ;;  %v1514_v19 = vld [vmem:[%s3024_s11 + $0x160] sm:$0xff]  ;;  %v548_v32 = vld [vmem:[%s3015_s20 + $0x130] sm:$0xff] }
  0x8c   : > { %v1337_v56 = vsel %vm3100_vm0, %v3098_v27, %v1331_v34  ;;  %v1340_v24 = vmul.f32 0.6931472, %v2420_v57  ;;  %v2422_v7 = vpop.eup %2421  ;;  %2437 = vpow2.f32 %v3114_v41  ;;  %vm3214_vm0 = vcmp.lt.f32.partialorder %v1290_v36, 0.0004427343  ;;  %v554_v52 = vld [vmem:[%s3015_s20 + $0x160] sm:$0xff] }
  0x8d   : > { %v1364_v28 = vsel %vm3104_vm1, %v3108_v37, %v1358_v61  ;;  %v1417_v27 = vadd.f32 %v1337_v56, %v649_v39  ;;  %v1367_v39 = vmul.f32 0.6931472, %v2422_v7  ;;  %v1317_v37 = vand.u32 2147483647, %v3134_v9 }
  0x8e   : > { %v1420_v11 = vadd.f32 %v1364_v28, %v652_v43  ;;  %v1346_v31 = vsel %vm3110_vm2, %v3118_v47, %v1340_v24  ;;  %v1315_v43 = vadd.f32 1.0, %v1314_v54  ;;  %v2424_v40 = vpop.eup %2423  ;;  %v556_v47 = vld [vmem:[%s3015_s20 + $0x170] sm:$0xff]  ;;  %v908_v41 = vmul.f32 1.442695, %v3120_v53  ;;  %v557_v24 = vld [vmem:[%s3015_s20 + $0x178] sm:$0xff] }
  0x8f   : > { %v1465_v63 = vsel %vm697_vm3, %v3031_v0, %v1417_v27  ;;  %v1418_v22 = vadd.f32 %v1346_v31, %v650_v44  ;;  %v1373_v44 = vsel %vm3124_vm5, %v3132_v55, %v1367_v39  ;;  %v2426_v33 = vpop.eup %2425  ;;  %v1517_v55 = vld [vmem:[%s3024_s11 + $0x178] sm:$0xff]  ;;  %v1322_v57 = vmul.f32 0.6931472, %v2424_v40 }
  0x90   : > { %v1468_v23 = vsel %vm700_vm4, %v3034_v1, %v1420_v11  ;;  %v1561_v0 = vmul.f32 %v1513_v10, %v1465_v63  ;;  %v1421_v1 = vadd.f32 %v1373_v44, %v653_v45  ;;  %v1349_v56 = vmul.f32 0.6931472, %v2426_v33 }
  0x91   : > { %v1564_v34 = vmul.f32 %v1516_v60, %v1468_v23  ;;  %v1466_v51 = vsel %vm698_vm6, %v3039_v4, %v1418_v22  ;;  %2439 = vpow2.f32 %v908_v41  ;;  %v1328_v4 = vsel %vm3140_vm8, %v3146_v29, %v1322_v57  ;;  %v1512_v60 = vld [vmem:[%s3024_s11 + $0x150] sm:$0xff]  ;;  %v1515_v29 = vld [vmem:[%s3024_s11 + $0x168] sm:$0xff] }
  0x92   : > { %v1609_v61 = vadd.f32 %v1561_v0, %v553_v17  ;;  %v1562_v54 = vmul.f32 %v1514_v19, %v1466_v51  ;;  %v1469_v45 = vsel %vm701_vm7, %v3042_v6, %v1421_v1  ;;  %v914_v36 = vmul.f32 1.442695, %v3136_v14  ;;  %v2428_v7 = vpop.eup %2427  ;;  %v552_v17 = vld [vmem:[%s3015_s20 + $0x150] sm:$0xff] }
  0x93   : > { %v1612_v53 = vadd.f32 %v1564_v34, %v556_v47  ;;  %v1565_v28 = vmul.f32 %v1517_v55, %v1469_v45  ;;  %v1355_v10 = vsel %vm3148_vm9, %v3153_v35, %v1349_v56  ;;  %v1416_v11 = vadd.f32 %v1328_v4, %v648_v48  ;;  %v2430_v6 = vpop.eup %2429  ;;  %v1511_v56 = vld [vmem:[%s3024_s11 + $0x148] sm:$0xff]  ;;  %v3331_v48 = vld [vmem:[%s3021_s23 + $0xf0] sm:$0xff] }
  0x94   : > { %v1610_v27 = vadd.f32 %v1562_v54, %v554_v52  ;;  %v1419_v15 = vadd.f32 %v1355_v10, %v651_v49  ;;  %v1277_v39 = vmul.f32 0.6931472, %v2428_v7  ;;  %2441 = vpow2.f32 %v914_v36  ;;  %v555_v49 = vld [vmem:[%s3015_s20 + $0x168] sm:$0xff] }
  0x95   : > { %v1724_v31 = vpack.c.bf16 %v1612_v53, %v1609_v61  ;;  %v1613_v14 = vadd.f32 %v1565_v28, %v557_v24  ;;  %v1464_v30 = vsel %vm696_vm10, %v3047_v12, %v1416_v11  ;;  %v1304_v35 = vmul.f32 0.6931472, %v2430_v6  ;;  %v2432_v63 = vpop.eup %2431  ;;  %v547_v52 = vld [vmem:[%s3015_s20 + $0x128] sm:$0xff] }
  0x96   : > { %vm3250_vm1 = vcmp.lt.f32.partialorder %v1317_v37, 0.0004427343  ;;  %v1467_v22 = vsel %vm699_vm11, %v3050_v13, %v1419_v15  ;;  %v1560_v19 = vmul.f32 %v1512_v60, %v1464_v30  ;;  %v1283_v40 = vsel %vm3165_vm12, %v3157_v18, %v1277_v39  ;;  %v1507_v13 = vld [vmem:[%s3024_s11 + $0x128] sm:$0xff]  ;;  %v1510_v18 = vld [vmem:[%s3024_s11 + $0x140] sm:$0xff] }
  0x97   : > { %1726 = vmatprep.subr.bf16.mxu0 %v1724_v31  ;;  %v1316_v12 = vmul.f32 %v3134_v9, %v1315_v43  ;;  %v2434_v37 = vpop.eup %2433  ;;  %v1725_v47 = vpack.c.bf16 %v1613_v14, %v1610_v27  ;;  %v1563_v23 = vmul.f32 %v1515_v29, %v1467_v22  ;;  %v1310_v0 = vsel %vm3178_vm13, %v3169_v5, %v1304_v35  ;;  %v551_v45 = vld [vmem:[%s3015_s20 + $0x148] sm:$0xff]  ;;  %v3321_v31 = vld [vmem:[%s3021_s23 + $0x100] sm:$0xff]  ;;  %v3326_v14 = vld [vmem:[%s3021_s23 + $0x118] sm:$0xff] }
  0x98   : > { %v1411_v44 = vadd.f32 %v1283_v40, %v643_v50  ;;  %v1608_v41 = vadd.f32 %v1560_v19, %v552_v17  ;;  %v1414_v3 = vadd.f32 %v1310_v0, %v646_v58  ;;  %v1286_v33 = vmul.f32 0.6931472, %v2432_v63  ;;  %v3272_v9 = vpop.eup %2435  ;;  %v550_v58 = vld [vmem:[%s3015_s20 + $0x140] sm:$0xff]  ;;  %v3336_v19 = vld [vmem:[%s3021_s23 + $0x108] sm:$0xff] }
  0x99   : > { %v1313_v34 = vmul.f32 0.6931472, %v2434_v37  ;;  %2267 = vmatprep.subr.bf16.mxu1 %v1725_v47  ;;  %v1611_v43 = vadd.f32 %v1563_v23, %v555_v49  ;;  %vm692_vm2 = vcmp.ne.f32.partialorder %v3062_v25, %v3062_v25  ;;  %vm695_vm3 = vcmp.ne.f32.partialorder %v3065_v26, %v3065_v26  ;;  %v3293_v51 = vpop.eup %2437  ;;  %v3343_v23 = vld [vmem:[%s3021_s23 + $0xc8] sm:$0xff] }
  0x9a   : > { %v1459_v50 = vsel %vm691_vm14, %v3055_v20, %v1411_v44  ;;  %2268 = vmatpush3.bf16.xpose.msra.mxu1 %v1725_v47  ;;  %v1462_v5 = vsel %vm694_vm15, %v3058_v21, %v1414_v3  ;;  %v1292_v20 = vsel %vm3214_vm0, %v3183_v46, %v1286_v33  ;;  %v1508_v21 = vld [vmem:[%s3024_s11 + $0x130] sm:$0xff]  ;;  %v1266_v24 = vadd.f32 1.0, %v3272_v9 }
  0x9b   : > { %v1555_v16 = vmul.f32 %v1507_v13, %v1459_v50  ;;  %v1319_v1 = vsel %vm3250_vm1, %v1316_v12, %v1313_v34  ;;  %v1723_v55 = vpack.c.bf16 %v1611_v43, %v1608_v41  ;;  %v1558_v57 = vmul.f32 %v1510_v18, %v1462_v5  ;;  %v3353_v41 = vld [vmem:[%s3021_s23 + $0xe0] sm:$0xff] }
  0x9c   : > { %v1412_v61 = vadd.f32 %v1292_v20, %v644_v59  ;;  %v1415_v54 = vadd.f32 %v1319_v1, %v647_v62  ;;  %v1293_v62 = vadd.f32 1.0, %v3293_v51  ;;  %2443 = vlog2.f32 %v1266_v24 }
  0x9d   : > { %v1603_v53 = vadd.f32 %v1555_v16, %v547_v52  ;;  %1727 = vmatpush1.bf16.xpose.msra.mxu0 %v1723_v55  ;;  %v1606_v46 = vadd.f32 %v1558_v57, %v550_v58  ;;  %v1269_v10 = vmul.f32 -0.5, %v3272_v9  ;;  %v1296_v60 = vmul.f32 -0.5, %v3293_v51  ;;  %v3367_v55 = vld [vmem:[%s3021_s23 + $0xd0] sm:$0xff] }
  0x9e   : > { %v1460_v4 = vsel %vm692_vm2, %v3062_v25, %v1412_v61  ;;  %v1463_v59 = vsel %vm695_vm3, %v3065_v26, %v1415_v54  ;;  %v3313_v36 = vpop.eup %2439  ;;  %2445 = vlog2.f32 %v1293_v62  ;;  %v1272_v29 = vand.u32 2147483647, %v3272_v9 }
  0x9f   : > { %v1556_v7 = vmul.f32 %v1508_v21, %v1460_v4  ;;  %v1559_v28 = vmul.f32 %v1511_v56, %v1463_v59  ;;  %v1721_v27 = vpack.c.bf16 %v1606_v46, %v1603_v53  ;;  %v1221_v26 = vadd.f32 1.0, %v3313_v36  ;;  %v3378_v53 = vld [vmem:[%s3021_s23 + $0xe8] sm:$0xff] }
  0xa0   : > { %v642_v17 = vmax.f32 %v3071_v38, 0.0  ;;  %v645_v30 = vmax.f32 %v3075_v42, 0.0  ;;  %v1270_v35 = vadd.f32 1.0, %v1269_v10  ;;  %v1297_v63 = vadd.f32 1.0, %v1296_v60  ;;  %v1506_v60 = vld [vmem:[%s3024_s11 + $0x120] sm:$0xff] }
  0xa1   : > { %v1604_v25 = vadd.f32 %v1556_v7, %v548_v32  ;;  %v1607_v11 = vadd.f32 %v1559_v28, %v551_v45  ;;  %v3317_v6 = vpop.eup %2441  ;;  %1728 = vmatprep.subr.bf16.mxu0 %v1721_v27  ;;  %2447 = vlog2.f32 %v1221_v26  ;;  %v1299_v49 = vand.u32 2147483647, %v3293_v51 }
  0xa2   : > { %v1248_v39 = vadd.f32 1.0, %v3317_v6  ;;  %v782_v22 = vand.u32 2147483647, %v3321_v31  ;;  %v637_v40 = vmax.f32 %v3089_v2, 0.0  ;;  %v640_v12 = vmax.f32 %v3092_v8, 0.0 }
  0xa3   : > { %v1722_v15 = vpack.c.bf16 %v1607_v11, %v1604_v25  ;;  %v1224_v37 = vmul.f32 -0.5, %v3313_v36  ;;  %v785_v47 = vand.u32 2147483647, %v3326_v14  ;;  %vm690_vm4 = vcmp.ne.f32.partialorder %v3071_v38, %v3071_v38 }
  0xa4   : > { %2449 = vlog2.f32 %v1248_v39  ;;  %vm3347_vm5 = vcmp.lt.f32.partialorder %v1272_v29, 0.0004427343  ;;  %v1227_v44 = vand.u32 2147483647, %v3313_v36  ;;  %v830_v13 = vsub.f32 0.0, %v782_v22  ;;  %v1509_v39 = vld [vmem:[%s3024_s11 + $0x138] sm:$0xff] }
  0xa5   : > { %2269 = vmatprep.subr.bf16.mxu1 %v1722_v15  ;;  %vm693_vm6 = vcmp.ne.f32.partialorder %v3075_v42, %v3075_v42  ;;  %v1251_v3 = vmul.f32 -0.5, %v3317_v6  ;;  %v833_v18 = vsub.f32 0.0, %v785_v47  ;;  %v780_v33 = vand.u32 2147483647, %v3331_v48  ;;  %v546_v22 = vld [vmem:[%s3015_s20 + $0x120] sm:$0xff] }
  0xa6   : > { %2270 = vmatpush3.bf16.xpose.msra.mxu1 %v1722_v15  ;;  %v783_v34 = vand.u32 2147483647, %v3336_v19  ;;  %v1271_v43 = vmul.f32 %v3272_v9, %v1270_v35  ;;  %v1298_v52 = vmul.f32 %v3293_v51, %v1297_v63  ;;  %vm3362_vm7 = vcmp.lt.f32.partialorder %v1299_v49, 0.0004427343 }
  0xa7   : > { %v910_v58 = vmul.f32 1.442695, %v830_v13  ;;  %v1225_v5 = vadd.f32 1.0, %v1224_v37  ;;  %v916_v16 = vmul.f32 1.442695, %v833_v18  ;;  %v828_v20 = vsub.f32 0.0, %v780_v33 }
  0xa8   : > { %v831_v1 = vsub.f32 0.0, %v783_v34  ;;  %vm3369_vm8 = vcmp.lt.f32.partialorder %v1227_v44, 0.0004427343  ;;  %v775_v9 = vand.u32 2147483647, %v3343_v23  ;;  %vm685_vm9 = vcmp.ne.f32.partialorder %v3089_v2, %v3089_v2 }
  0xa9   : > { %2451 = vpow2.f32 %v910_v58  ;;  %v778_v51 = vand.u32 2147483647, %v3353_v41  ;;  %v2444_v61 = vpop.eup %2443  ;;  %v1252_v54 = vadd.f32 1.0, %v1251_v3  ;;  %v906_v21 = vmul.f32 1.442695, %v828_v20  ;;  %v1504_v58 = vld [vmem:[%s3024_s11 + $0x110] sm:$0xff] }
  0xaa   : > { %2453 = vpow2.f32 %v916_v16  ;;  %v912_v56 = vmul.f32 1.442695, %v831_v1  ;;  %v1268_v46 = vmul.f32 0.6931472, %v2444_v61  ;;  %v1254_v32 = vand.u32 2147483647, %v3317_v6 }
  0xab   : > { %v2446_v24 = vpop.eup %2445  ;;  %v823_v45 = vsub.f32 0.0, %v775_v9  ;;  %v826_v4 = vsub.f32 0.0, %v778_v51  ;;  %v1226_v62 = vmul.f32 %v3313_v36, %v1225_v5  ;;  %2455 = vpow2.f32 %v906_v21  ;;  %v541_v5 = vld [vmem:[%s3015_s20 + $0xf8] sm:$0xff]  ;;  %v544_v9 = vld [vmem:[%s3015_s20 + $0x110] sm:$0xff] }
  0xac   : > { %v1295_v59 = vmul.f32 0.6931472, %v2446_v24  ;;  %v776_v7 = vand.u32 2147483647, %v3367_v55  ;;  %v1274_v28 = vsel %vm3347_vm5, %v1271_v43, %v1268_v46  ;;  %2457 = vpow2.f32 %v912_v56  ;;  %v1501_v43 = vld [vmem:[%s3024_s11 + $0xf8] sm:$0xff] }
  0xad   : > { %v896_v27 = vmul.f32 1.442695, %v823_v45  ;;  %v902_v10 = vmul.f32 1.442695, %v826_v4  ;;  %v1410_v11 = vadd.f32 %v1274_v28, %v642_v17  ;;  %v779_v26 = vand.u32 2147483647, %v3378_v53 }
  0xae   : > { %v1301_v25 = vsel %vm3362_vm7, %v1298_v52, %v1295_v59  ;;  %v824_v15 = vsub.f32 0.0, %v776_v7  ;;  %v2448_v36 = vpop.eup %2447  ;;  %v1253_v35 = vmul.f32 %v3317_v6, %v1252_v54  ;;  %vm3393_vm10 = vcmp.lt.f32.partialorder %v1254_v32, 0.0004427343 }
  0xaf   : > { %v1413_v29 = vadd.f32 %v1301_v25, %v645_v30  ;;  %2459 = vpow2.f32 %v896_v27  ;;  %v1458_v17 = vsel %vm690_vm4, %v3071_v38, %v1410_v11  ;;  %v1223_v37 = vmul.f32 0.6931472, %v2448_v36  ;;  %v549_v30 = vld [vmem:[%s3015_s20 + $0x138] sm:$0xff]  ;;  %v3437_v25 = vld [vmem:[%s3021_s23 + $0xc0] sm:$0xff] }
  0xb0   : > { %2461 = vpow2.f32 %v902_v10  ;;  %v827_v47 = vsub.f32 0.0, %v779_v26  ;;  %v1554_v0 = vmul.f32 %v1506_v60, %v1458_v17  ;;  %v898_v13 = vmul.f32 1.442695, %v824_v15  ;;  %v3440_v11 = vld [vmem:[%s3021_s23 + $0xd8] sm:$0xff] }
  0xb1   : > { %v2450_v49 = vpop.eup %2449  ;;  %v1461_v6 = vsel %vm693_vm6, %v3075_v42, %v1413_v29  ;;  %vm688_vm11 = vcmp.ne.f32.partialorder %v3092_v8, %v3092_v8  ;;  %v1229_v38 = vsel %vm3369_vm8, %v1226_v62, %v1223_v37  ;;  %v638_v20 = vmax.f32 %v3321_v31, 0.0 }
  0xb2   : > { %v1250_v44 = vmul.f32 0.6931472, %v2450_v49  ;;  %v1557_v3 = vmul.f32 %v1509_v39, %v1461_v6  ;;  %v904_v18 = vmul.f32 1.442695, %v827_v47  ;;  %v1602_v33 = vadd.f32 %v1554_v0, %v546_v22 }
  0xb3   : > { %v1405_v42 = vadd.f32 %v1229_v38, %v637_v40  ;;  %2463 = vpow2.f32 %v898_v13  ;;  %v636_v56 = vmax.f32 %v3331_v48, 0.0  ;;  %v631_v45 = vmax.f32 %v3343_v23, 0.0 }
  0xb4   : > { %v1256_v34 = vsel %vm3393_vm10, %v1253_v35, %v1250_v44  ;;  %v1605_v52 = vadd.f32 %v1557_v3, %v549_v30  ;;  %2465 = vpow2.f32 %v904_v18  ;;  %v634_v62 = vmax.f32 %v3353_v41, 0.0 }
  0xb5   : > { %v1408_v50 = vadd.f32 %v1256_v34, %v640_v12  ;;  %v1453_v16 = vsel %vm685_vm9, %v3089_v2, %v1405_v42  ;;  %v641_v12 = vmax.f32 %v3326_v14, 0.0  ;;  %v639_v2 = vmax.f32 %v3336_v19, 0.0 }
  0xb6   : > { %v2452_v1 = vpop.eup %2451  ;;  %v1720_v57 = vpack.c.bf16 %v1605_v52, %v1602_v33  ;;  %v1549_v51 = vmul.f32 %v1501_v43, %v1453_v16  ;;  %v632_v10 = vmax.f32 %v3367_v55, 0.0  ;;  %v635_v36 = vmax.f32 %v3378_v53, 0.0 }
  0xb7   : > { %v1456_v40 = vsel %vm688_vm11, %v3092_v8, %v1408_v50  ;;  %v2454_v61 = vpop.eup %2453  ;;  %v1230_v21 = vadd.f32 1.0, %v2452_v1  ;;  %v1233_v46 = vmul.f32 -0.5, %v2452_v1  ;;  %v1236_v28 = vand.u32 2147483647, %v2452_v1 }
  0xb8   : > { %v1552_v54 = vmul.f32 %v1504_v58, %v1456_v40  ;;  %1729 = vmatpush1.bf16.xpose.msra.mxu0 %v1720_v57  ;;  %v1597_v24 = vadd.f32 %v1549_v51, %v541_v5  ;;  %v1257_v32 = vadd.f32 1.0, %v2454_v61  ;;  %v2456_v4 = vpop.eup %2455  ;;  %v1260_v59 = vmul.f32 -0.5, %v2454_v61 }
  0xb9   : > { %2467 = vlog2.f32 %v1230_v21  ;;  %v2458_v7 = vpop.eup %2457  ;;  %v1212_v27 = vadd.f32 1.0, %v2456_v4  ;;  %v1263_v26 = vand.u32 2147483647, %v2454_v61  ;;  %v1215_v15 = vmul.f32 -0.5, %v2456_v4 }
  0xba   : > { %v1600_v8 = vadd.f32 %v1552_v54, %v544_v9  ;;  %2469 = vlog2.f32 %v1257_v32  ;;  %v1234_v39 = vadd.f32 1.0, %v1233_v46  ;;  %v1239_v35 = vadd.f32 1.0, %v2458_v7 }
  0xbb   : > { %2471 = vlog2.f32 %v1212_v27  ;;  %v1242_v63 = vmul.f32 -0.5, %v2458_v7  ;;  %v1261_v22 = vadd.f32 1.0, %v1260_v59  ;;  %v774_v37 = vand.u32 2147483647, %v3437_v25  ;;  %v3477_v59 = vld [vmem:[%s3021_s23 + $0xb0] sm:$0xff] }
  0xbc   : > { %v1718_v60 = vpack.c.bf16 %v1600_v8, %v1597_v24  ;;  %v2460_v29 = vpop.eup %2459  ;;  %v777_v47 = vand.u32 2147483647, %v3440_v11  ;;  %vm3445_vm12 = vcmp.lt.f32.partialorder %v1236_v28, 0.0004427343  ;;  %v1218_v6 = vand.u32 2147483647, %v2456_v4 }
  0xbd   : > { %v2462_v49 = vpop.eup %2461  ;;  %v1167_v17 = vadd.f32 1.0, %v2460_v29  ;;  %2473 = vlog2.f32 %v1239_v35  ;;  %v1170_v0 = vmul.f32 -0.5, %v2460_v29  ;;  %vm3449_vm13 = vcmp.lt.f32.partialorder %v1263_v26, 0.0004427343 }
  0xbe   : > { %1730 = vmatprep.subr.bf16.mxu0 %v1718_v60  ;;  %v1216_v13 = vadd.f32 1.0, %v1215_v15  ;;  %v1194_v3 = vadd.f32 1.0, %v2462_v49  ;;  %v1235_v18 = vmul.f32 %v2452_v1, %v1234_v39  ;;  %v1243_v33 = vadd.f32 1.0, %v1242_v63 }
  0xbf   : > { %2475 = vlog2.f32 %v1167_v17  ;;  %v1245_v34 = vand.u32 2147483647, %v2458_v7  ;;  %v1197_v42 = vmul.f32 -0.5, %v2462_v49  ;;  %vm686_vm14 = vcmp.ne.f32.partialorder %v3321_v31, %v3321_v31 }
  0xc0   : > { %v2464_v38 = vpop.eup %2463  ;;  %v1262_v52 = vmul.f32 %v2454_v61, %v1261_v22  ;;  %2477 = vlog2.f32 %v1194_v3  ;;  %vm689_vm15 = vcmp.ne.f32.partialorder %v3326_v14, %v3326_v14  ;;  %vm3459_vm0 = vcmp.lt.f32.partialorder %v1218_v6, 0.0004427343  ;;  %v3465_v61 = vld [vmem:[%s3021_s23 + $0x98] sm:$0xff]  ;;  %v1496_v3 = vld [vmem:[%s3024_s11 + $0xd0] sm:$0xff] }
  0xc1   : > { %v3453_v43 = vpop.eup %2465  ;;  %v1176_v50 = vadd.f32 1.0, %v2464_v38  ;;  %v1179_v58 = vmul.f32 -0.5, %v2464_v38  ;;  %v1171_v16 = vadd.f32 1.0, %v1170_v0  ;;  %v1173_v1 = vand.u32 2147483647, %v2460_v29 }
  0xc2   : > { %v1203_v57 = vadd.f32 1.0, %v3453_v43  ;;  %v1217_v9 = vmul.f32 %v2456_v4, %v1216_v13  ;;  %v1198_v40 = vadd.f32 1.0, %v1197_v42  ;;  %v1200_v51 = vand.u32 2147483647, %v2462_v49  ;;  %v1502_v42 = vld [vmem:[%s3024_s11 + $0x100] sm:$0xff] }
  0xc3   : > { %2479 = vlog2.f32 %v1176_v50  ;;  %vm684_vm1 = vcmp.ne.f32.partialorder %v3331_v48, %v3331_v48  ;;  %v3469_v54 = vmul.f32 %v2458_v7, %v1243_v33  ;;  %vm3471_vm2 = vcmp.lt.f32.partialorder %v1245_v34, 0.0004427343 }
  0xc4   : > { %2481 = vlog2.f32 %v1203_v57  ;;  %v1206_v24 = vmul.f32 -0.5, %v3453_v43  ;;  %v1180_v46 = vadd.f32 1.0, %v1179_v58  ;;  %v1182_v32 = vand.u32 2147483647, %v2464_v38 }
  0xc5   : > { %v822_v4 = vsub.f32 0.0, %v774_v37  ;;  %v825_v8 = vsub.f32 0.0, %v777_v47  ;;  %vm687_vm3 = vcmp.ne.f32.partialorder %v3336_v19, %v3336_v19  ;;  %v1172_v27 = vmul.f32 %v2460_v29, %v1171_v16  ;;  %v542_v16 = vld [vmem:[%s3015_s20 + $0x100] sm:$0xff] }
  0xc6   : > { %v2468_v28 = vpop.eup %2467  ;;  %vm3481_vm4 = vcmp.lt.f32.partialorder %v1173_v1, 0.0004427343  ;;  %v1209_v60 = vand.u32 2147483647, %v3453_v43  ;;  %v769_v26 = vand.u32 2147483647, %v3465_v61  ;;  %v3487_v35 = vmul.f32 %v2462_v49, %v1198_v40 }
  0xc7   : > { %v2470_v15 = vpop.eup %2469  ;;  %v1232_v39 = vmul.f32 0.6931472, %v2468_v28  ;;  %vm3489_vm5 = vcmp.lt.f32.partialorder %v1200_v51, 0.0004427343  ;;  %v894_v22 = vmul.f32 1.442695, %v822_v4  ;;  %vm679_vm6 = vcmp.ne.f32.partialorder %v3343_v23, %v3343_v23 }
  0xc8   : > { %v900_v17 = vmul.f32 1.442695, %v825_v8  ;;  %v1259_v29 = vmul.f32 0.6931472, %v2470_v15  ;;  %v1207_v37 = vadd.f32 1.0, %v1206_v24  ;;  %v817_v6 = vsub.f32 0.0, %v769_v26  ;;  %v2472_v0 = vpop.eup %2471 }
  0xc9   : > { %v772_v47 = vand.u32 2147483647, %v3477_v59  ;;  %v1238_v49 = vsel %vm3445_vm12, %v1235_v18, %v1232_v39  ;;  %v3498_v13 = vmul.f32 %v2464_v38, %v1180_v46  ;;  %vm3500_vm7 = vcmp.lt.f32.partialorder %v1182_v32, 0.0004427343  ;;  %v1505_v18 = vld [vmem:[%s3024_s11 + $0x118] sm:$0xff]  ;;  %v1500_v4 = vld [vmem:[%s3024_s11 + $0xf0] sm:$0xff] }
  0xca   : > { %2483 = vpow2.f32 %v894_v22  ;;  %v1265_v33 = vsel %vm3449_vm13, %v1262_v52, %v1259_v29  ;;  %v1406_v34 = vadd.f32 %v1238_v49, %v638_v20  ;;  %v1214_v50 = vmul.f32 0.6931472, %v2472_v0  ;;  %v2474_v30 = vpop.eup %2473  ;;  %v545_v51 = vld [vmem:[%s3015_s20 + $0x118] sm:$0xff]  ;;  %v3538_v28 = vld [vmem:[%s3021_s23 + $0xa0] sm:$0xff]  ;;  %v1503_v15 = vld [vmem:[%s3024_s11 + $0x108] sm:$0xff] }
  0xcb   : > { %vm682_vm8 = vcmp.ne.f32.partialorder %v3353_v41, %v3353_v41  ;;  %2485 = vpow2.f32 %v900_v17  ;;  %v1409_v38 = vadd.f32 %v1265_v33, %v641_v12  ;;  %vm3514_vm9 = vcmp.lt.f32.partialorder %v1209_v60, 0.0004427343  ;;  %v3563_v33 = vld [vmem:[%s3021_s23 + $0xb8] sm:$0xff] }
  0xcc   : > { %v820_v44 = vsub.f32 0.0, %v772_v47  ;;  %v884_v52 = vmul.f32 1.442695, %v817_v6  ;;  %v2476_v20 = vpop.eup %2475  ;;  %v1454_v1 = vsel %vm686_vm14, %v3321_v31, %v1406_v34  ;;  %v1220_v57 = vsel %vm3459_vm0, %v1217_v9, %v1214_v50  ;;  %v1495_v47 = vld [vmem:[%s3024_s11 + $0xc8] sm:$0xff]  ;;  %v1498_v50 = vld [vmem:[%s3024_s11 + $0xe0] sm:$0xff] }
  0xcd   : > { %v1241_v12 = vmul.f32 0.6931472, %v2474_v30  ;;  %v1208_v40 = vmul.f32 %v3453_v43, %v1207_v37  ;;  %v1457_v24 = vsel %vm689_vm15, %v3326_v14, %v1409_v38  ;;  %v1550_v46 = vmul.f32 %v1502_v42, %v1454_v1  ;;  %v2478_v8 = vpop.eup %2477  ;;  %v540_v14 = vld [vmem:[%s3015_s20 + $0xf0] sm:$0xff]  ;;  %v543_v37 = vld [vmem:[%s3015_s20 + $0x108] sm:$0xff] }
  0xce   : > { %v1404_v32 = vadd.f32 %v1220_v57, %v636_v56  ;;  %v1169_v31 = vmul.f32 0.6931472, %v2476_v20  ;;  %v1553_v5 = vmul.f32 %v1505_v18, %v1457_v24  ;;  %2487 = vpow2.f32 %v884_v52  ;;  %v535_v34 = vld [vmem:[%s3015_s20 + $0xc8] sm:$0xff]  ;;  %v538_v18 = vld [vmem:[%s3015_s20 + $0xe0] sm:$0xff] }
  0xcf   : > { %v1247_v9 = vsel %vm3471_vm2, %v3469_v54, %v1241_v12  ;;  %v890_v43 = vmul.f32 1.442695, %v820_v44  ;;  %v1598_v60 = vadd.f32 %v1550_v46, %v542_v16  ;;  %v1196_v17 = vmul.f32 0.6931472, %v2478_v8  ;;  %v1499_v57 = vld [vmem:[%s3024_s11 + $0xe8] sm:$0xff] }
  0xd0   : > { %v1407_v26 = vadd.f32 %v1247_v9, %v639_v2  ;;  %v1452_v56 = vsel %vm684_vm1, %v3331_v48, %v1404_v32  ;;  %v1175_v54 = vsel %vm3481_vm4, %v1172_v27, %v1169_v31  ;;  %v2480_v21 = vpop.eup %2479  ;;  %v1601_v39 = vadd.f32 %v1553_v5, %v545_v51  ;;  %v539_v46 = vld [vmem:[%s3015_s20 + $0xe8] sm:$0xff] }
  0xd1   : > { %v1548_v22 = vmul.f32 %v1500_v4, %v1452_v56  ;;  %v1399_v29 = vadd.f32 %v1175_v54, %v631_v45  ;;  %v2482_v2 = vpop.eup %2481  ;;  %v1178_v7 = vmul.f32 0.6931472, %v2480_v21  ;;  %2489 = vpow2.f32 %v890_v43 }
  0xd2   : > { %v1455_v48 = vsel %vm687_vm3, %v3336_v19, %v1407_v26  ;;  %v770_v27 = vand.u32 2147483647, %v3538_v28  ;;  %v1719_v6 = vpack.c.bf16 %v1601_v39, %v1598_v60  ;;  %v1202_v45 = vsel %vm3489_vm5, %v3487_v35, %v1196_v17  ;;  %v3610_v39 = vld [vmem:[%s3021_s23 + $0x90] sm:$0xff] }
  0xd3   : > { %v1551_v0 = vmul.f32 %v1503_v15, %v1455_v48  ;;  %v1596_v49 = vadd.f32 %v1548_v22, %v540_v14  ;;  %v1402_v19 = vadd.f32 %v1202_v45, %v634_v62  ;;  %v1447_v42 = vsel %vm679_vm6, %v3343_v23, %v1399_v29  ;;  %v3614_v29 = vld [vmem:[%s3021_s23 + $0xa8] sm:$0xff] }
  0xd4   : > { %v1184_v30 = vsel %vm3500_vm7, %v3498_v13, %v1178_v7  ;;  %v1205_v38 = vmul.f32 0.6931472, %v2482_v2  ;;  %2271 = vmatprep.subr.bf16.mxu1 %v1719_v6  ;;  %v1543_v63 = vmul.f32 %v1495_v47, %v1447_v42  ;;  %vm680_vm10 = vcmp.ne.f32.partialorder %v3367_v55, %v3367_v55  ;;  %v3619_v7 = vld [vmem:[%s3021_s23 + $0x68] sm:$0xff] }
  0xd5   : > { %v1599_v35 = vadd.f32 %v1551_v0, %v543_v37  ;;  %v1400_v62 = vadd.f32 %v1184_v30, %v632_v10  ;;  %2272 = vmatpush3.bf16.xpose.msra.mxu1 %v1719_v6  ;;  %v1450_v23 = vsel %vm682_vm8, %v3353_v41, %v1402_v19  ;;  %vm683_vm11 = vcmp.ne.f32.partialorder %v3378_v53, %v3378_v53  ;;  %v536_v41 = vld [vmem:[%s3015_s20 + $0xd0] sm:$0xff] }
  0xd6   : > { %v1211_v13 = vsel %vm3514_vm9, %v1208_v40, %v1205_v38  ;;  %v773_v44 = vand.u32 2147483647, %v3563_v33  ;;  %v1546_v10 = vmul.f32 %v1498_v50, %v1450_v23  ;;  %v1591_v16 = vadd.f32 %v1543_v63, %v535_v34  ;;  %v3641_v63 = vld [vmem:[%s3021_s23 + $0x70] sm:$0xff] }
  0xd7   : > { %v2484_v52 = vpop.eup %2483  ;;  %v1717_v20 = vpack.c.bf16 %v1599_v35, %v1596_v49  ;;  %v1403_v1 = vadd.f32 %v1211_v13, %v635_v36  ;;  %v1448_v58 = vsel %vm680_vm10, %v3367_v55, %v1400_v62  ;;  %v818_v51 = vsub.f32 0.0, %v770_v27  ;;  %v3627_v49 = vld [vmem:[%s3021_s23 + $0x80] sm:$0xff] }
  0xd8   : > { %v2486_v12 = vpop.eup %2485  ;;  %v1158_v40 = vadd.f32 1.0, %v2484_v52  ;;  %v1594_v24 = vadd.f32 %v1546_v10, %v538_v18  ;;  %v1544_v4 = vmul.f32 %v1496_v3, %v1448_v58  ;;  %v821_v8 = vsub.f32 0.0, %v773_v44  ;;  %v3649_v3 = vld [vmem:[%s3021_s23 + $0x88] sm:$0xff] }
  0xd9   : > { %1731 = vmatpush1.bf16.xpose.msra.mxu0 %v1717_v20  ;;  %v1451_v32 = vsel %vm683_vm11, %v3378_v53, %v1403_v1  ;;  %v1185_v36 = vadd.f32 1.0, %v2486_v12  ;;  %v1161_v60 = vmul.f32 -0.5, %v2484_v52  ;;  %v886_v14 = vmul.f32 1.442695, %v818_v51 }
  0xda   : > { %v1547_v31 = vmul.f32 %v1499_v57, %v1451_v32  ;;  %2491 = vlog2.f32 %v1158_v40  ;;  %v1715_v5 = vpack.c.bf16 %v1594_v24, %v1591_v16  ;;  %v1592_v9 = vadd.f32 %v1544_v4, %v536_v41 }
  0xdb   : > { %2493 = vlog2.f32 %v1185_v36  ;;  %v3604_v55 = vpop.eup %2487  ;;  %v1188_v26 = vmul.f32 -0.5, %v2486_v12  ;;  %v892_v15 = vmul.f32 1.442695, %v821_v8  ;;  %v1164_v21 = vand.u32 2147483647, %v2484_v52 }
  0xdc   : > { %v1595_v43 = vadd.f32 %v1547_v31, %v539_v46  ;;  %1732 = vmatprep.subr.bf16.mxu0 %v1715_v5  ;;  %v1113_v56 = vadd.f32 1.0, %v3604_v55  ;;  %2495 = vpow2.f32 %v886_v14  ;;  %v1162_v22 = vadd.f32 1.0, %v1161_v60  ;;  %v1494_v60 = vld [vmem:[%s3024_s11 + $0xc0] sm:$0xff] }
  0xdd   : > { %v630_v2 = vmax.f32 %v3437_v25, 0.0  ;;  %v633_v37 = vmax.f32 %v3440_v11, 0.0  ;;  %v1189_v48 = vadd.f32 1.0, %v1188_v26  ;;  %v1191_v47 = vand.u32 2147483647, %v2486_v12 }
  0xde   : > { %v1716_v53 = vpack.c.bf16 %v1595_v43, %v1592_v9  ;;  %v3607_v54 = vpop.eup %2489  ;;  %2497 = vlog2.f32 %v1113_v56  ;;  %vm678_vm12 = vcmp.ne.f32.partialorder %v3437_v25, %v3437_v25  ;;  %v625_v27 = vmax.f32 %v3465_v61, 0.0 }
  0xdf   : > { %v1140_v17 = vadd.f32 1.0, %v3607_v54  ;;  %2499 = vpow2.f32 %v892_v15  ;;  %v1116_v6 = vmul.f32 -0.5, %v3604_v55  ;;  %v768_v0 = vand.u32 2147483647, %v3610_v39 }
  0xe0   : > { %2273 = vmatprep.subr.bf16.mxu1 %v1716_v53  ;;  %vm681_vm13 = vcmp.ne.f32.partialorder %v3440_v11, %v3440_v11  ;;  %vm3631_vm14 = vcmp.lt.f32.partialorder %v1164_v21, 0.0004427343  ;;  %v628_v34 = vmax.f32 %v3477_v59, 0.0  ;;  %v1143_v19 = vmul.f32 -0.5, %v3607_v54 }
  0xe1   : > { %2274 = vmatpush3.bf16.xpose.msra.mxu1 %v1716_v53  ;;  %2501 = vlog2.f32 %v1140_v17  ;;  %v771_v42 = vand.u32 2147483647, %v3614_v29  ;;  %v1163_v50 = vmul.f32 %v2484_v52, %v1162_v22  ;;  %v1119_v30 = vand.u32 2147483647, %v3604_v55  ;;  %v1497_v53 = vld [vmem:[%s3024_s11 + $0xd8] sm:$0xff]  ;;  %v534_v17 = vld [vmem:[%s3015_s20 + $0xc0] sm:$0xff] }
  0xe2   : > { %v816_v38 = vsub.f32 0.0, %v768_v0  ;;  %v763_v35 = vand.u32 2147483647, %v3619_v7  ;;  %v1190_v62 = vmul.f32 %v2486_v12, %v1189_v48  ;;  %vm3643_vm15 = vcmp.lt.f32.partialorder %v1191_v47, 0.0004427343  ;;  %v537_v47 = vld [vmem:[%s3015_s20 + $0xd8] sm:$0xff] }
  0xe3   : > { %v819_v23 = vsub.f32 0.0, %v771_v42  ;;  %v766_v13 = vand.u32 2147483647, %v3627_v49  ;;  %v1117_v44 = vadd.f32 1.0, %v1116_v6  ;;  %v1146_v52 = vand.u32 2147483647, %v3607_v54 }
  0xe4   : > { %v882_v20 = vmul.f32 1.442695, %v816_v38  ;;  %v811_v10 = vsub.f32 0.0, %v763_v35  ;;  %vm673_vm0 = vcmp.ne.f32.partialorder %v3465_v61, %v3465_v61  ;;  %v1144_v1 = vadd.f32 1.0, %v1143_v19  ;;  %v1489_v35 = vld [vmem:[%s3024_s11 + $0x98] sm:$0xff] }
  0xe5   : > { %v888_v57 = vmul.f32 1.442695, %v819_v23  ;;  %v814_v12 = vsub.f32 0.0, %v766_v13  ;;  %v764_v41 = vand.u32 2147483647, %v3641_v63  ;;  %vm676_vm1 = vcmp.ne.f32.partialorder %v3477_v59, %v3477_v59 }
  0xe6   : > { %2503 = vpow2.f32 %v882_v20  ;;  %v872_v51 = vmul.f32 1.442695, %v811_v10  ;;  %v767_v24 = vand.u32 2147483647, %v3649_v3  ;;  %v1118_v31 = vmul.f32 %v3604_v55, %v1117_v44  ;;  %v529_v10 = vld [vmem:[%s3015_s20 + $0x98] sm:$0xff] }
  0xe7   : > { %v2492_v16 = vpop.eup %2491  ;;  %2505 = vpow2.f32 %v888_v57  ;;  %v878_v32 = vmul.f32 1.442695, %v814_v12  ;;  %v812_v4 = vsub.f32 0.0, %v764_v41  ;;  %vm3667_vm2 = vcmp.lt.f32.partialorder %v1119_v30, 0.0004427343 }
  0xe8   : > { %v2494_v58 = vpop.eup %2493  ;;  %v1160_v40 = vmul.f32 0.6931472, %v2492_v16  ;;  %2507 = vpow2.f32 %v872_v51  ;;  %v815_v8 = vsub.f32 0.0, %v767_v24  ;;  %v1145_v55 = vmul.f32 %v3607_v54, %v1144_v1  ;;  %v1492_v1 = vld [vmem:[%s3024_s11 + $0xb0] sm:$0xff] }
  0xe9   : > { %v1187_v46 = vmul.f32 0.6931472, %v2494_v58  ;;  %v3661_v5 = vpop.eup %2495  ;;  %2509 = vpow2.f32 %v878_v32  ;;  %v874_v14 = vmul.f32 1.442695, %v812_v4  ;;  %vm3688_vm3 = vcmp.lt.f32.partialorder %v1146_v52, 0.0004427343 }
  0xea   : > { %v1166_v36 = vsel %vm3631_vm14, %v1163_v50, %v1160_v40  ;;  %v1122_v21 = vadd.f32 1.0, %v3661_v5  ;;  %v880_v0 = vmul.f32 1.442695, %v815_v8  ;;  %v629_v23 = vmax.f32 %v3563_v33, 0.0  ;;  %v532_v24 = vld [vmem:[%s3015_s20 + $0xb0] sm:$0xff] }
  0xeb   : > { %v1193_v9 = vsel %vm3643_vm15, %v1190_v62, %v1187_v46  ;;  %v1398_v43 = vadd.f32 %v1166_v36, %v630_v2  ;;  %v2498_v26 = vpop.eup %2497  ;;  %2511 = vpow2.f32 %v874_v14  ;;  %v626_v62 = vmax.f32 %v3538_v28, 0.0 }
  0xec   : > { %v1401_v56 = vadd.f32 %v1193_v9, %v633_v37  ;;  %v3673_v22 = vpop.eup %2499  ;;  %v1115_v48 = vmul.f32 0.6931472, %v2498_v26  ;;  %v1125_v37 = vmul.f32 -0.5, %v3661_v5  ;;  %2513 = vlog2.f32 %v1122_v21  ;;  %v533_v26 = vld [vmem:[%s3015_s20 + $0xb8] sm:$0xff] }
  0xed   : > { %v1446_v2 = vsel %vm678_vm12, %v3437_v25, %v1398_v43  ;;  %v1149_v50 = vadd.f32 1.0, %v3673_v22  ;;  %v1128_v13 = vand.u32 2147483647, %v3661_v5  ;;  %v1152_v12 = vmul.f32 -0.5, %v3673_v22 }
  0xee   : > { %v1449_v54 = vsel %vm681_vm13, %v3440_v11, %v1401_v56  ;;  %v1542_v6 = vmul.f32 %v1494_v60, %v1446_v2  ;;  %v2502_v45 = vpop.eup %2501  ;;  %v1121_v42 = vsel %vm3667_vm2, %v1118_v31, %v1115_v48  ;;  %v1126_v20 = vadd.f32 1.0, %v1125_v37  ;;  %v3725_v60 = vld [vmem:[%s3021_s23 + $0x60] sm:$0xff]  ;;  %v3739_v2 = vld [vmem:[%s3021_s23 + $0x78] sm:$0xff] }
  0xef   : > { %v1545_v19 = vmul.f32 %v1497_v53, %v1449_v54  ;;  %v1142_v38 = vmul.f32 0.6931472, %v2502_v45  ;;  %v1393_v11 = vadd.f32 %v1121_v42, %v625_v27  ;;  %2515 = vlog2.f32 %v1149_v50 }
  0xf0   : > { %v1590_v30 = vadd.f32 %v1542_v6, %v534_v17  ;;  %2517 = vpow2.f32 %v880_v0  ;;  %v1155_v41 = vand.u32 2147483647, %v3673_v22  ;;  %v624_v58 = vmax.f32 %v3610_v39, 0.0 }
  0xf1   : > { %v1593_v18 = vadd.f32 %v1545_v19, %v537_v47  ;;  %v1148_v44 = vsel %vm3688_vm3, %v1145_v55, %v1142_v38  ;;  %v1441_v52 = vsel %vm673_vm0, %v3465_v61, %v1393_v11  ;;  %v627_v40 = vmax.f32 %v3614_v29, 0.0 }
  0xf2   : > { %v1396_v16 = vadd.f32 %v1148_v44, %v628_v34  ;;  %v1537_v57 = vmul.f32 %v1489_v35, %v1441_v52  ;;  %v619_v61 = vmax.f32 %v3619_v7, 0.0  ;;  %v622_v46 = vmax.f32 %v3627_v49, 0.0 }
  0xf3   : > { %v1714_v27 = vpack.c.bf16 %v1593_v18, %v1590_v30  ;;  %v2504_v51 = vpop.eup %2503  ;;  %v620_v32 = vmax.f32 %v3641_v63, 0.0  ;;  %v623_v4 = vmax.f32 %v3649_v3, 0.0  ;;  %vm674_vm4 = vcmp.ne.f32.partialorder %v3538_v28, %v3538_v28 }
  0xf4   : > { %v1444_v34 = vsel %vm676_vm1, %v3477_v59, %v1396_v16  ;;  %v2506_v36 = vpop.eup %2505  ;;  %v1585_v8 = vadd.f32 %v1537_v57, %v529_v10  ;;  %v1104_v9 = vadd.f32 1.0, %v2504_v51  ;;  %v1107_v43 = vmul.f32 -0.5, %v2504_v51 }
  0xf5   : > { %1733 = vmatpush1.bf16.xpose.msra.mxu0 %v1714_v27  ;;  %v1540_v31 = vmul.f32 %v1492_v1, %v1444_v34  ;;  %v2508_v14 = vpop.eup %2507  ;;  %v1127_v59 = vmul.f32 %v3661_v5, %v1126_v20  ;;  %vm3728_vm5 = vcmp.lt.f32.partialorder %v1128_v13, 0.0004427343  ;;  %v1153_v56 = vadd.f32 1.0, %v1152_v12  ;;  %v1490_v12 = vld [vmem:[%s3024_s11 + $0xa0] sm:$0xff] }
  0xf6   : > { %v1131_v53 = vadd.f32 1.0, %v2506_v36  ;;  %v3732_v15 = vpop.eup %2509  ;;  %vm3734_vm6 = vcmp.lt.f32.partialorder %v1155_v41, 0.0004427343  ;;  %2519 = vlog2.f32 %v1104_v9  ;;  %v1134_v17 = vmul.f32 -0.5, %v2506_v36  ;;  %v530_v9 = vld [vmem:[%s3015_s20 + $0xa0] sm:$0xff] }
  0xf7   : > { %v1588_v55 = vadd.f32 %v1540_v31, %v532_v24  ;;  %vm677_vm7 = vcmp.ne.f32.partialorder %v3563_v33, %v3563_v33  ;;  %v1110_v5 = vand.u32 2147483647, %v2504_v51  ;;  %v1059_v48 = vadd.f32 1.0, %v2508_v14 }
  0xf8   : > { %2521 = vlog2.f32 %v1131_v53  ;;  %v762_v37 = vand.u32 2147483647, %v3725_v60  ;;  %v3744_v47 = vpop.eup %2511  ;;  %v1108_v6 = vadd.f32 1.0, %v1107_v43  ;;  %v1137_v0 = vand.u32 2147483647, %v2506_v36  ;;  %v1493_v53 = vld [vmem:[%s3024_s11 + $0xb8] sm:$0xff] }
  0xf9   : > { %v1712_v54 = vpack.c.bf16 %v1588_v55, %v1585_v8  ;;  %v1062_v45 = vmul.f32 -0.5, %v2508_v14  ;;  %v2514_v19 = vpop.eup %2513  ;;  %2523 = vlog2.f32 %v1059_v48  ;;  %v1086_v42 = vadd.f32 1.0, %v3732_v15 }
  0xfa   : > { %v1089_v25 = vmul.f32 -0.5, %v3732_v15  ;;  %v765_v50 = vand.u32 2147483647, %v3739_v2  ;;  %v1124_v30 = vmul.f32 0.6931472, %v2514_v19  ;;  %v1135_v38 = vadd.f32 1.0, %v1134_v17 }
  0xfb   : > { %1734 = vmatprep.subr.bf16.mxu0 %v1712_v54  ;;  %v1065_v11 = vand.u32 2147483647, %v2508_v14  ;;  %v1068_v35 = vadd.f32 1.0, %v3744_v47  ;;  %v1154_v18 = vmul.f32 %v3673_v22, %v1153_v56  ;;  %vm3751_vm8 = vcmp.lt.f32.partialorder %v1110_v5, 0.0004427343  ;;  %v3792_v17 = vld [vmem:[%s3021_s23 + $0x38] sm:$0xff] }
  0xfc   : > { %2525 = vlog2.f32 %v1086_v42  ;;  %v810_v44 = vsub.f32 0.0, %v762_v37  ;;  %v2516_v52 = vpop.eup %2515  ;;  %v1130_v20 = vsel %vm3728_vm5, %v1127_v59, %v1124_v30  ;;  %v3757_v27 = vmul.f32 %v2504_v51, %v1108_v6  ;;  %v3801_v54 = vld [vmem:[%s3021_s23 + $0x50] sm:$0xff] }
  0xfd   : > { %vm3759_vm9 = vcmp.lt.f32.partialorder %v1137_v0, 0.0004427343  ;;  %v1063_v16 = vadd.f32 1.0, %v1062_v45  ;;  %2527 = vlog2.f32 %v1068_v35  ;;  %v3763_v22 = vpop.eup %2517  ;;  %v1151_v1 = vmul.f32 0.6931472, %v2516_v52 }
  0xfe   : > { %v1394_v57 = vadd.f32 %v1130_v20, %v626_v62  ;;  %v1090_v41 = vadd.f32 1.0, %v1089_v25  ;;  %v1071_v24 = vmul.f32 -0.5, %v3744_v47  ;;  %vm672_vm10 = vcmp.ne.f32.partialorder %v3610_v39, %v3610_v39 }
  0xff   : > { %v1136_v51 = vmul.f32 %v2506_v36, %v1135_v38  ;;  %vm3771_vm11 = vcmp.lt.f32.partialorder %v1065_v11, 0.0004427343  ;;  %v1092_v31 = vand.u32 2147483647, %v3732_v15  ;;  %v1095_v8 = vadd.f32 1.0, %v3763_v22 }
 0x100   : > { %v1157_v62 = vsel %vm3734_vm6, %v1154_v18, %v1151_v1  ;;  %v1442_v43 = vsel %vm674_vm4, %v3538_v28, %v1394_v57  ;;  %vm675_vm12 = vcmp.ne.f32.partialorder %v3614_v29, %v3614_v29  ;;  %v1098_v36 = vmul.f32 -0.5, %v3763_v22  ;;  %v3831_v57 = vld [vmem:[%s3021_s23 + $0x40] sm:$0xff] }
 0x101   : > { %v813_v59 = vsub.f32 0.0, %v765_v50  ;;  %v1397_v56 = vadd.f32 %v1157_v62, %v629_v23  ;;  %v1538_v55 = vmul.f32 %v1490_v12, %v1442_v43  ;;  %v1064_v21 = vmul.f32 %v2508_v14, %v1063_v16 }
 0x102   : > { %2529 = vlog2.f32 %v1095_v8  ;;  %vm667_vm13 = vcmp.ne.f32.partialorder %v3619_v7, %v3619_v7  ;;  %v3797_v28 = vmul.f32 %v3732_v15, %v1090_v41  ;;  %v1072_v5 = vadd.f32 1.0, %v1071_v24  ;;  %v1488_v24 = vld [vmem:[%s3024_s11 + $0x90] sm:$0xff]  ;;  %v1491_v8 = vld [vmem:[%s3024_s11 + $0xa8] sm:$0xff] }
 0x103   : > { %v1074_v48 = vand.u32 2147483647, %v3744_v47  ;;  %v870_v37 = vmul.f32 1.442695, %v810_v44  ;;  %v1445_v23 = vsel %vm677_vm7, %v3563_v33, %v1397_v56  ;;  %vm3807_vm14 = vcmp.lt.f32.partialorder %v1092_v31, 0.0004427343  ;;  %v2520_v15 = vpop.eup %2519 }
 0x104   : > { %v1101_v6 = vand.u32 2147483647, %v3763_v22  ;;  %v876_v0 = vmul.f32 1.442695, %v813_v59  ;;  %v1541_v45 = vmul.f32 %v1493_v53, %v1445_v23  ;;  %v1586_v19 = vadd.f32 %v1538_v55, %v530_v9  ;;  %v523_v23 = vld [vmem:[%s3015_s20 + $0x68] sm:$0xff] }
 0x105   : > { %vm670_vm15 = vcmp.ne.f32.partialorder %v3627_v49, %v3627_v49  ;;  %v1099_v42 = vadd.f32 1.0, %v1098_v36  ;;  %2531 = vpow2.f32 %v870_v37  ;;  %v2522_v25 = vpop.eup %2521  ;;  %v1106_v50 = vmul.f32 0.6931472, %v2520_v15  ;;  %v3843_v36 = vld [vmem:[%s3021_s23 + $0x58] sm:$0xff] }
 0x106   : > { %vm668_vm0 = vcmp.ne.f32.partialorder %v3641_v63, %v3641_v63  ;;  %2533 = vpow2.f32 %v876_v0  ;;  %v757_v33 = vand.u32 2147483647, %v3792_v17  ;;  %v760_v30 = vand.u32 2147483647, %v3801_v54  ;;  %v2524_v44 = vpop.eup %2523 }
 0x107   : > { %v1589_v38 = vadd.f32 %v1541_v45, %v533_v26  ;;  %v1133_v11 = vmul.f32 0.6931472, %v2522_v25  ;;  %v1073_v35 = vmul.f32 %v3744_v47, %v1072_v5  ;;  %vm3819_vm1 = vcmp.lt.f32.partialorder %v1074_v48, 0.0004427343  ;;  %v531_v26 = vld [vmem:[%s3015_s20 + $0xa8] sm:$0xff] }
 0x108   : > { %v1112_v52 = vsel %vm3751_vm8, %v3757_v27, %v1106_v50  ;;  %vm3826_vm2 = vcmp.lt.f32.partialorder %v1101_v6, 0.0004427343  ;;  %v805_v16 = vsub.f32 0.0, %v757_v33  ;;  %v808_v1 = vsub.f32 0.0, %v760_v30  ;;  %v1486_v6 = vld [vmem:[%s3024_s11 + $0x80] sm:$0xff] }
 0x109   : > { %v1713_v47 = vpack.c.bf16 %v1589_v38, %v1586_v19  ;;  %v1139_v12 = vsel %vm3759_vm9, %v1136_v51, %v1133_v11  ;;  %v1392_v41 = vadd.f32 %v1112_v52, %v624_v58  ;;  %v1061_v13 = vmul.f32 0.6931472, %v2524_v44  ;;  %v2526_v27 = vpop.eup %2525  ;;  %v528_v51 = vld [vmem:[%s3015_s20 + $0x90] sm:$0xff] }
 0x10a   : > { %v1395_v31 = vadd.f32 %v1139_v12, %v627_v40  ;;  %v1100_v9 = vmul.f32 %v3763_v22, %v1099_v42  ;;  %v860_v62 = vmul.f32 1.442695, %v805_v16  ;;  %v866_v43 = vmul.f32 1.442695, %v808_v1  ;;  %v2528_v10 = vpop.eup %2527  ;;  %v1484_v19 = vld [vmem:[%s3024_s11 + $0x70] sm:$0xff]  ;;  %v526_v42 = vld [vmem:[%s3015_s20 + $0x80] sm:$0xff] }
 0x10b   : > { %2275 = vmatprep.subr.bf16.mxu1 %v1713_v47  ;;  %v1440_v58 = vsel %vm672_vm10, %v3610_v39, %v1392_v41  ;;  %v1067_v40 = vsel %vm3771_vm11, %v1064_v21, %v1061_v13  ;;  %v1088_v59 = vmul.f32 0.6931472, %v2526_v27  ;;  %v758_v22 = vand.u32 2147483647, %v3831_v57  ;;  %v1483_v39 = vld [vmem:[%s3024_s11 + $0x68] sm:$0xff]  ;;  %v524_v52 = vld [vmem:[%s3015_s20 + $0x70] sm:$0xff] }
 0x10c   : > { %v1443_v56 = vsel %vm675_vm12, %v3614_v29, %v1395_v31  ;;  %v1536_v53 = vmul.f32 %v1488_v24, %v1440_v58  ;;  %2276 = vmatpush3.bf16.xpose.msra.mxu1 %v1713_v47  ;;  %v1387_v55 = vadd.f32 %v1067_v40, %v619_v61  ;;  %v1070_v34 = vmul.f32 0.6931472, %v2528_v10  ;;  %v527_v24 = vld [vmem:[%s3015_s20 + $0x88] sm:$0xff] }
 0x10d   : > { %v1539_v5 = vmul.f32 %v1491_v8, %v1443_v56  ;;  %v1094_v21 = vsel %vm3807_vm14, %v3797_v28, %v1088_v59  ;;  %2535 = vpow2.f32 %v860_v62  ;;  %v761_v48 = vand.u32 2147483647, %v3843_v36  ;;  %v3901_v8 = vld [vmem:[%s3021_s23 + $0x30] sm:$0xff]  ;;  %v3908_v10 = vld [vmem:[%s3021_s23 + $0x8] sm:$0xff] }
 0x10e   : > { %v1584_v37 = vadd.f32 %v1536_v53, %v528_v51  ;;  %v1390_v29 = vadd.f32 %v1094_v21, %v622_v46  ;;  %v1435_v61 = vsel %vm667_vm13, %v3619_v7, %v1387_v55  ;;  %v1076_v0 = vsel %vm3819_vm1, %v1073_v35, %v1070_v34  ;;  %v3918_v53 = vld [vmem:[%s3021_s23 + $0x20] sm:$0xff] }
 0x10f   : > { %v2530_v14 = vpop.eup %2529  ;;  %v1587_v15 = vadd.f32 %v1539_v5, %v531_v26  ;;  %v1531_v28 = vmul.f32 %v1483_v39, %v1435_v61  ;;  %v1388_v45 = vadd.f32 %v1076_v0, %v620_v32  ;;  %2537 = vpow2.f32 %v866_v43 }
 0x110   : > { %v1438_v46 = vsel %vm670_vm15, %v3627_v49, %v1390_v29  ;;  %v1097_v7 = vmul.f32 0.6931472, %v2530_v14  ;;  %v806_v25 = vsub.f32 0.0, %v758_v22  ;;  %v809_v50 = vsub.f32 0.0, %v761_v48 }
 0x111   : > { %v1711_v33 = vpack.c.bf16 %v1587_v15, %v1584_v37  ;;  %v1534_v30 = vmul.f32 %v1486_v6, %v1438_v46  ;;  %v1579_v38 = vadd.f32 %v1531_v28, %v523_v23  ;;  %v1436_v32 = vsel %vm668_vm0, %v3641_v63, %v1388_v45  ;;  %v1487_v63 = vld [vmem:[%s3024_s11 + $0x88] sm:$0xff] }
 0x112   : > { %v2532_v11 = vpop.eup %2531  ;;  %vm671_vm3 = vcmp.ne.f32.partialorder %v3649_v3, %v3649_v3  ;;  %v1103_v49 = vsel %vm3826_vm2, %v1100_v9, %v1097_v7  ;;  %v1532_v35 = vmul.f32 %v1484_v19, %v1436_v32  ;;  %v862_v47 = vmul.f32 1.442695, %v806_v25 }
 0x113   : > { %v3891_v18 = vpop.eup %2533  ;;  %1735 = vmatpush1.bf16.xpose.msra.mxu0 %v1711_v33  ;;  %v1582_v44 = vadd.f32 %v1534_v30, %v526_v42  ;;  %v1391_v16 = vadd.f32 %v1103_v49, %v623_v4  ;;  %v1050_v1 = vadd.f32 1.0, %v2532_v11  ;;  %v868_v41 = vmul.f32 1.442695, %v809_v50  ;;  %v3904_v4 = vld [vmem:[%s3021_s23 + $0x48] sm:$0xff] }
 0x114   : > { %v1077_v12 = vadd.f32 1.0, %v3891_v18  ;;  %v1580_v31 = vadd.f32 %v1532_v35, %v524_v52  ;;  %v1053_v62 = vmul.f32 -0.5, %v2532_v11  ;;  %v756_v43 = vand.u32 2147483647, %v3901_v8 }
 0x115   : > { %v1709_v20 = vpack.c.bf16 %v1582_v44, %v1579_v38  ;;  %v1439_v13 = vsel %vm671_vm3, %v3649_v3, %v1391_v16  ;;  %2539 = vlog2.f32 %v1050_v1  ;;  %v1080_v58 = vmul.f32 -0.5, %v3891_v18 }
 0x116   : > { %v1535_v27 = vmul.f32 %v1487_v63, %v1439_v13  ;;  %2541 = vlog2.f32 %v1077_v12  ;;  %v759_v40 = vand.u32 2147483647, %v3904_v4  ;;  %v804_v22 = vsub.f32 0.0, %v756_v43  ;;  %v1485_v13 = vld [vmem:[%s3024_s11 + $0x78] sm:$0xff] }
 0x117   : > { %1736 = vmatprep.subr.bf16.mxu0 %v1709_v20  ;;  %2543 = vpow2.f32 %v862_v47  ;;  %v751_v55 = vand.u32 2147483647, %v3908_v10  ;;  %v1054_v39 = vadd.f32 1.0, %v1053_v62  ;;  %v1056_v5 = vand.u32 2147483647, %v2532_v11  ;;  %v1482_v47 = vld [vmem:[%s3024_s11 + $0x60] sm:$0xff] }
 0x118   : > { %v1583_v9 = vadd.f32 %v1535_v27, %v527_v24  ;;  %2545 = vpow2.f32 %v868_v41  ;;  %v807_v56 = vsub.f32 0.0, %v759_v40  ;;  %v1081_v21 = vadd.f32 1.0, %v1080_v58  ;;  %v3958_v20 = vld [vmem:[%s3021_s23 + $0x10] sm:$0xff]  ;;  %v522_v62 = vld [vmem:[%s3015_s20 + $0x60] sm:$0xff]  ;;  %v525_v40 = vld [vmem:[%s3015_s20 + $0x78] sm:$0xff] }
 0x119   : > { %v858_v48 = vmul.f32 1.442695, %v804_v22  ;;  %v799_v37 = vsub.f32 0.0, %v751_v55  ;;  %v1083_v23 = vand.u32 2147483647, %v3891_v18  ;;  %v618_v6 = vmax.f32 %v3725_v60, 0.0 }
 0x11a   : > { %v3910_v51 = vpop.eup %2535  ;;  %v1710_v3 = vpack.c.bf16 %v1583_v9, %v1580_v31  ;;  %v864_v29 = vmul.f32 1.442695, %v807_v56  ;;  %v754_v61 = vand.u32 2147483647, %v3918_v53  ;;  %v621_v15 = vmax.f32 %v3739_v2, 0.0  ;;  %v3966_v9 = vld [vmem:[%s3021_s23 + $0x28] sm:$0xff] }
 0x11b   : > { %v1005_v59 = vadd.f32 1.0, %v3910_v51  ;;  %v1008_v0 = vmul.f32 -0.5, %v3910_v51  ;;  %v848_v14 = vmul.f32 1.442695, %v799_v37  ;;  %v1055_v28 = vmul.f32 %v2532_v11, %v1054_v39 }
 0x11c   : > { %v3915_v26 = vpop.eup %2537  ;;  %2277 = vmatprep.subr.bf16.mxu1 %v1710_v3  ;;  %v802_v45 = vsub.f32 0.0, %v754_v61  ;;  %vm3927_vm4 = vcmp.lt.f32.partialorder %v1056_v5, 0.0004427343  ;;  %v1082_v46 = vmul.f32 %v3891_v18, %v1081_v21  ;;  %vm666_vm5 = vcmp.ne.f32.partialorder %v3725_v60, %v3725_v60  ;;  %v1631_v5 = vld [vmem:[#allocation2 + $0x8] sm:$0xff]  ;;  %v1634_v21 = vld [vmem:[#allocation2 + $0x20] sm:$0xff] }
 0x11d   : > { %2278 = vmatpush3.bf16.xpose.msra.mxu1 %v1710_v3  ;;  %2547 = vlog2.f32 %v1005_v59  ;;  %v1032_v34 = vadd.f32 1.0, %v3915_v26  ;;  %v1035_v7 = vmul.f32 -0.5, %v3915_v26  ;;  %vm669_vm6 = vcmp.ne.f32.partialorder %v3739_v2, %v3739_v2 }
 0x11e   : > { %vm3937_vm7 = vcmp.lt.f32.partialorder %v1083_v23, 0.0004427343  ;;  %v613_v32 = vmax.f32 %v3792_v17, 0.0  ;;  %v616_v11 = vmax.f32 %v3801_v54, 0.0  ;;  %v1009_v49 = vadd.f32 1.0, %v1008_v0 }
 0x11f   : > { %2549 = vlog2.f32 %v1032_v34  ;;  %vm661_vm8 = vcmp.ne.f32.partialorder %v3792_v17, %v3792_v17  ;;  %v1011_v44 = vand.u32 2147483647, %v3910_v51  ;;  %v854_v16 = vmul.f32 1.442695, %v802_v45 }
 0x120   : > { %2551 = vpow2.f32 %v858_v48  ;;  %v1036_v12 = vadd.f32 1.0, %v1035_v7  ;;  %vm664_vm9 = vcmp.ne.f32.partialorder %v3801_v54, %v3801_v54  ;;  %v1038_v27 = vand.u32 2147483647, %v3915_v26 }
 0x121   : > { %2553 = vpow2.f32 %v864_v29  ;;  %v614_v31 = vmax.f32 %v3831_v57, 0.0  ;;  %v1010_v3 = vmul.f32 %v3910_v51, %v1009_v49  ;;  %v752_v56 = vand.u32 2147483647, %v3958_v20 }
 0x122   : > { %v2540_v19 = vpop.eup %2539  ;;  %2555 = vpow2.f32 %v848_v14  ;;  %vm3981_vm10 = vcmp.lt.f32.partialorder %v1011_v44, 0.0004427343  ;;  %v755_v51 = vand.u32 2147483647, %v3966_v9  ;;  %vm3989_vm11 = vcmp.lt.f32.partialorder %v1038_v27, 0.0004427343 }
 0x123   : > { %v2542_v25 = vpop.eup %2541  ;;  %v1052_v50 = vmul.f32 0.6931472, %v2540_v19  ;;  %v800_v45 = vsub.f32 0.0, %v752_v56  ;;  %v1679_v19 = vpack.c.bf16 %v1634_v21, %v1631_v5  ;;  %vm662_vm12 = vcmp.ne.f32.partialorder %v3831_v57, %v3831_v57 }
 0x124   : > { %v3941_v30 = vpop.eup %2543  ;;  %v1079_v38 = vmul.f32 0.6931472, %v2542_v25  ;;  %v1477_v25 = vld [vmem:[%s3024_s11 + $0x38] sm:$0xff]  ;;  %v803_v33 = vsub.f32 0.0, %v755_v51  ;;  %vm665_vm14 = vcmp.ne.f32.partialorder %v3843_v36, %v3843_v36  ;;  %vm660_vm2 = vcmp.ne.f32.partialorder %v3901_v8, %v3901_v8 }
 0x125   : > { %v3945_v35 = vpop.eup %2545  ;;  %v1058_v18 = vsel %vm3927_vm4, %v1055_v28, %v1052_v50  ;;  %v1014_v52 = vadd.f32 1.0, %v3941_v30  ;;  %v1017_v58 = vmul.f32 -0.5, %v3941_v30  ;;  %1758 = vmatprep.mubr.bf16.mxu0 %v1679_v19  ;;  %vm663_vm3 = vcmp.ne.f32.partialorder %v3904_v4, %v3904_v4 }
 0x126   : > { %v1085_v63 = vsel %vm3937_vm7, %v1082_v46, %v1079_v38  ;;  %v1386_v1 = vadd.f32 %v1058_v18, %v618_v6  ;;  %v1041_v41 = vadd.f32 1.0, %v3945_v35  ;;  %v1044_v23 = vmul.f32 -0.5, %v3945_v35  ;;  %v4003_v38 = vld [vmem:[%s3021_s23] sm:$0xff]  ;;  %v1635_v6 = vld [vmem:[#allocation2 + $0x28] sm:$0xff] }
 0x127   : > { %v1389_v24 = vadd.f32 %v1085_v63, %v621_v15  ;;  %2557 = vlog2.f32 %v1014_v52  ;;  %v1018_v0 = vadd.f32 1.0, %v1017_v58  ;;  %v517_v63 = vld [vmem:[%s3015_s20 + $0x38] sm:$0xff]  ;;  %v750_v27 = vand.u32 2147483647, %v4003_v38 }
 0x128   : > { %v1434_v43 = vsel %vm666_vm5, %v3725_v60, %v1386_v1  ;;  %2559 = vlog2.f32 %v1041_v41  ;;  %v1037_v60 = vmul.f32 %v3915_v26, %v1036_v12  ;;  %v617_v26 = vmax.f32 %v3843_v36, 0.0  ;;  %v1480_v12 = vld [vmem:[%s3024_s11 + $0x50] sm:$0xff] }
 0x129   : > { %v1437_v59 = vsel %vm669_vm6, %v3739_v2, %v1389_v24  ;;  %v1530_v22 = vmul.f32 %v1482_v47, %v1434_v43  ;;  %2561 = vpow2.f32 %v854_v16  ;;  %v1020_v2 = vand.u32 2147483647, %v3941_v30  ;;  %v4017_v16 = vld [vmem:[%s3021_s23 + $0x18] sm:$0xff]  ;;  %s4210_s23 = scalar_lea.hbm %s4269_s7, %s2248_s2 }
 0x12a   : > { %v2548_v55 = vpop.eup %2547  ;;  %v1533_v39 = vmul.f32 %v1485_v13, %v1437_v59  ;;  %v1047_v41 = vand.u32 2147483647, %v3945_v35  ;;  %v850_v13 = vmul.f32 1.442695, %v800_v45  ;;  %v856_v43 = vmul.f32 1.442695, %v803_v33 }
 0x12b   : > { %v1578_v48 = vadd.f32 %v1530_v22, %v522_v62  ;;  %v1007_v37 = vmul.f32 0.6931472, %v2548_v55  ;;  %vm4011_vm13 = vcmp.lt.f32.partialorder %v1020_v2, 0.0004427343  ;;  %v520_v62 = vld [vmem:[%s3015_s20 + $0x50] sm:$0xff]  ;;  %v1019_v59 = vmul.f32 %v3941_v30, %v1018_v0  ;;  %v518_v33 = vld [vmem:[%s3015_s20 + $0x40] sm:$0xff] }
 0x12c   : > { %v2550_v29 = vpop.eup %2549  ;;  %v1581_v61 = vadd.f32 %v1533_v39, %v525_v40  ;;  %vm4041_vm15 = vcmp.lt.f32.partialorder %v1047_v41, 0.0004427343  ;;  %v798_v5 = vsub.f32 0.0, %v750_v27  ;;  %v1476_v39 = vld [vmem:[%s3024_s11 + $0x30] sm:$0xff]  ;;  %vm655_vm5 = vcmp.ne.f32.partialorder %v3908_v10, %v3908_v10 }
 0x12d   : > { %v3994_v14 = vpop.eup %2551  ;;  %v1013_v15 = vsel %vm3981_vm10, %v1010_v3, %v1007_v37  ;;  %v1034_v28 = vmul.f32 0.6931472, %v2550_v29  ;;  %v753_v3 = vand.u32 2147483647, %v4017_v16  ;;  %vm658_vm7 = vcmp.ne.f32.partialorder %v3918_v53, %v3918_v53 }
 0x12e   : > { %v3998_v42 = vpop.eup %2553  ;;  %v1708_v46 = vpack.c.bf16 %v1581_v61, %v1578_v48  ;;  %v1381_v7 = vadd.f32 %v1013_v15, %v613_v32  ;;  %v996_v50 = vadd.f32 1.0, %v3994_v14  ;;  %v1045_v32 = vadd.f32 1.0, %v1044_v23  ;;  %v1632_v61 = vld [vmem:[#allocation2 + $0x10] sm:$0xff] }
 0x12f   : > { %v4005_v49 = vpop.eup %2555  ;;  %v1040_v18 = vsel %vm3989_vm11, %v1037_v60, %v1034_v28  ;;  %v1023_v52 = vadd.f32 1.0, %v3998_v42  ;;  %v999_v22 = vmul.f32 -0.5, %v3994_v14  ;;  %v1002_v48 = vand.u32 2147483647, %v3994_v14  ;;  %v1478_v28 = vld [vmem:[%s3024_s11 + $0x40] sm:$0xff] }
 0x130   : > { %1737 = vmatpush1.bf16.xpose.msra.mxu0 %v1708_v46  ;;  %v1384_v1 = vadd.f32 %v1040_v18, %v616_v11  ;;  %v1429_v47 = vsel %vm661_vm8, %v3792_v17, %v1381_v7  ;;  %2563 = vlog2.f32 %v996_v50  ;;  %v951_v17 = vadd.f32 1.0, %v4005_v49  ;;  %v1481_v7 = vld [vmem:[%s3024_s11 + $0x58] sm:$0xff] }
 0x131   : > { %v1525_v24 = vmul.f32 %v1477_v25, %v1429_v47  ;;  %2565 = vlog2.f32 %v1023_v52  ;;  %v1046_v55 = vmul.f32 %v3945_v35, %v1045_v32  ;;  %v801_v35 = vsub.f32 0.0, %v753_v3  ;;  %v521_v52 = vld [vmem:[%s3015_s20 + $0x58] sm:$0xff] }
 0x132   : > { %v1432_v11 = vsel %vm664_vm9, %v3801_v54, %v1384_v1  ;;  %v1026_v54 = vmul.f32 -0.5, %v3998_v42  ;;  %2567 = vlog2.f32 %v951_v17  ;;  %v1000_v23 = vadd.f32 1.0, %v999_v22  ;;  %v1474_v1 = vld [vmem:[%s3024_s11 + $0x20] sm:$0xff] }
 0x133   : > { %v1528_v58 = vmul.f32 %v1480_v12, %v1432_v11  ;;  %v1573_v40 = vadd.f32 %v1525_v24, %v517_v63  ;;  %2569 = vpow2.f32 %v850_v13  ;;  %v954_v19 = vmul.f32 -0.5, %v4005_v49 }
 0x134   : > { %v2558_v56 = vpop.eup %2557  ;;  %2571 = vpow2.f32 %v856_v43  ;;  %v1027_v45 = vadd.f32 1.0, %v1026_v54  ;;  %v846_v25 = vmul.f32 1.442695, %v798_v5  ;;  %v852_v50 = vmul.f32 1.442695, %v801_v35  ;;  %v1479_v5 = vld [vmem:[%s3024_s11 + $0x48] sm:$0xff] }
 0x135   : > { %v2560_v34 = vpop.eup %2559  ;;  %v1576_v60 = vadd.f32 %v1528_v58, %v520_v62  ;;  %v1016_v51 = vmul.f32 0.6931472, %v2558_v56  ;;  %v1029_v44 = vand.u32 2147483647, %v3998_v42  ;;  %v1680_v32 = vpack.c.bf16 %v1635_v6, %v1632_v61  ;;  %v516_v35 = vld [vmem:[%s3015_s20 + $0x30] sm:$0xff] }
 0x136   : > { %v4046_v21 = vpop.eup %2561  ;;  %v1043_v30 = vmul.f32 0.6931472, %v2560_v34  ;;  %vm4073_vm0 = vcmp.lt.f32.partialorder %v1002_v48, 0.0004427343  ;;  %v955_v12 = vadd.f32 1.0, %v954_v19  ;;  %v1028_v13 = vmul.f32 %v3998_v42, %v1027_v45 }
 0x137   : > { %v1706_v37 = vpack.c.bf16 %v1576_v60, %v1573_v40  ;;  %v1022_v2 = vsel %vm4011_vm13, %v1019_v59, %v1016_v51  ;;  %v978_v29 = vadd.f32 1.0, %v4046_v21  ;;  %2283 = vmatprep.mubr.bf16.mxu1 %v1680_v32  ;;  %v957_v27 = vand.u32 2147483647, %v4005_v49 }
 0x138   : > { %v1049_v0 = vsel %vm4041_vm15, %v1046_v55, %v1043_v30  ;;  %v1382_v15 = vadd.f32 %v1022_v2, %v614_v31  ;;  %v612_v31 = vmax.f32 %v3901_v8, 0.0  ;;  %v615_v17 = vmax.f32 %v3904_v4, 0.0 }
 0x139   : > { %1738 = vmatprep.subr.bf16.mxu0 %v1706_v37  ;;  %v1385_v46 = vadd.f32 %v1049_v0, %v617_v26  ;;  %2573 = vlog2.f32 %v978_v29  ;;  %vm4082_vm1 = vcmp.lt.f32.partialorder %v1029_v44, 0.0004427343  ;;  %v607_v40 = vmax.f32 %v3908_v10, 0.0 }
 0x13a   : > { %v1430_v18 = vsel %vm662_vm12, %v3831_v57, %v1382_v15  ;;  %2575 = vpow2.f32 %v846_v25  ;;  %v1001_v57 = vmul.f32 %v3994_v14, %v1000_v23  ;;  %v956_v59 = vmul.f32 %v4005_v49, %v955_v12  ;;  %v519_v23 = vld [vmem:[%s3015_s20 + $0x48] sm:$0xff]  ;;  %v514_v12 = vld [vmem:[%s3015_s20 + $0x20] sm:$0xff] }
 0x13b   : > { %v1433_v26 = vsel %vm665_vm14, %v3843_v36, %v1385_v46  ;;  %v1526_v63 = vmul.f32 %v1478_v28, %v1430_v18  ;;  %2577 = vpow2.f32 %v852_v50  ;;  %v981_v36 = vmul.f32 -0.5, %v4046_v21 }
 0x13c   : > { %v1529_v47 = vmul.f32 %v1481_v7, %v1433_v26  ;;  %vm4097_vm4 = vcmp.lt.f32.partialorder %v957_v27, 0.0004427343  ;;  %v984_v48 = vand.u32 2147483647, %v4046_v21  ;;  %v610_v46 = vmax.f32 %v3918_v53, 0.0  ;;  %v1471_v7 = vld [vmem:[%s3024_s11 + $0x8] sm:$0xff] }
 0x13d   : > { %v2564_v41 = vpop.eup %2563  ;;  %v1574_v24 = vadd.f32 %v1526_v63, %v518_v33  ;;  %v982_v34 = vadd.f32 1.0, %v981_v36  ;;  %v511_v26 = vld [vmem:[%s3015_s20 + $0x8] sm:$0xff]  ;;  %vm656_vm10 = vcmp.ne.f32.partialorder %v3958_v20, %v3958_v20  ;;  %vm659_vm11 = vcmp.ne.f32.partialorder %v3966_v9, %v3966_v9 }
 0x13e   : > { %v2566_v62 = vpop.eup %2565  ;;  %v1577_v11 = vadd.f32 %v1529_v47, %v521_v52  ;;  %v998_v43 = vmul.f32 0.6931472, %v2564_v41  ;;  %vm985_vm6 = vcmp.lt.f32.partialorder %v984_v48, 0.0004427343  ;;  %vm654_vm14 = vcmp.ne.f32.partialorder %v4003_v38, %v4003_v38 }
 0x13f   : > { %v1025_v14 = vmul.f32 0.6931472, %v2566_v62  ;;  %v2568_v22 = vpop.eup %2567  ;;  %vm657_vm15 = vcmp.ne.f32.partialorder %v4017_v16, %v4017_v16 }
 0x140   : > { %v1707_v42 = vpack.c.bf16 %v1577_v11, %v1574_v24  ;;  %v1004_v58 = vsel %vm4073_vm0, %v1001_v57, %v998_v43  ;;  %v2570_v60 = vpop.eup %2569  ;;  %v953_v30 = vmul.f32 0.6931472, %v2568_v22 }
 0x141   : > { %v1031_v56 = vsel %vm4082_vm1, %v1028_v13, %v1025_v14  ;;  %v1380_v55 = vadd.f32 %v1004_v58, %v612_v31  ;;  %v2572_v49 = vpop.eup %2571  ;;  %v960_v2 = vadd.f32 1.0, %v2570_v60  ;;  %v963_v33 = vmul.f32 -0.5, %v2570_v60 }
 0x142   : > { %2279 = vmatprep.subr.bf16.mxu1 %v1707_v42  ;;  %v1383_v51 = vadd.f32 %v1031_v56, %v615_v17  ;;  %v959_v6 = vsel %vm4097_vm4, %v956_v59, %v953_v30  ;;  %v987_v0 = vadd.f32 1.0, %v2572_v49  ;;  %v990_v47 = vmul.f32 -0.5, %v2572_v49 }
 0x143   : > { %v1428_v37 = vsel %vm660_vm2, %v3901_v8, %v1380_v55  ;;  %2280 = vmatpush3.bf16.xpose.msra.mxu1 %v1707_v42  ;;  %v983_v8 = vmul.f32 %v4046_v21, %v982_v34  ;;  %v1375_v28 = vadd.f32 %v959_v6, %v607_v40  ;;  %2579 = vlog2.f32 %v960_v2  ;;  %v512_v2 = vld [vmem:[%s3015_s20 + $0x10] sm:$0xff] }
 0x144   : > { %v1431_v29 = vsel %vm663_vm3, %v3904_v4, %v1383_v51  ;;  %v1524_v61 = vmul.f32 %v1476_v39, %v1428_v37  ;;  %2581 = vlog2.f32 %v987_v0  ;;  %v964_v13 = vadd.f32 1.0, %v963_v33  ;;  %v510_v33 = vld [vmem:[%s3015_s20] sm:$0xff] }
 0x145   : > { %v1527_v15 = vmul.f32 %v1479_v5, %v1431_v29  ;;  %v1423_v50 = vsel %vm655_vm5, %v3908_v10, %v1375_v28  ;;  %v966_v27 = vand.u32 2147483647, %v2570_v60  ;;  %v991_v36 = vadd.f32 1.0, %v990_v47  ;;  %v1472_v5 = vld [vmem:[%s3024_s11 + $0x10] sm:$0xff]  ;;  %v1638_v47 = vld [vmem:[#allocation2 + $0x40] sm:$0xff] }
 0x146   : > { %v2574_v45 = vpop.eup %2573  ;;  %v1572_v19 = vadd.f32 %v1524_v61, %v516_v35  ;;  %v1519_v32 = vmul.f32 %v1471_v7, %v1423_v50  ;;  %v993_v11 = vand.u32 2147483647, %v2572_v49  ;;  %v965_v3 = vmul.f32 %v2570_v60, %v964_v13  ;;  %v515_v61 = vld [vmem:[%s3015_s20 + $0x28] sm:$0xff] }
 0x147   : > { %v1575_v4 = vadd.f32 %v1527_v15, %v519_v23  ;;  %v980_v25 = vmul.f32 0.6931472, %v2574_v45  ;;  %v2576_v21 = vpop.eup %2575  ;;  %v608_v58 = vmax.f32 %v3958_v20, 0.0  ;;  %vm967_vm8 = vcmp.lt.f32.partialorder %v966_v27, 0.0004427343 }
 0x148   : > { %v2578_v18 = vpop.eup %2577  ;;  %v942_v52 = vadd.f32 1.0, %v2576_v21  ;;  %v1567_v24 = vadd.f32 %v1519_v32, %v511_v26  ;;  %v945_v17 = vmul.f32 -0.5, %v2576_v21  ;;  %v992_v40 = vmul.f32 %v2572_v49, %v991_v36  ;;  %v1475_v49 = vld [vmem:[%s3024_s11 + $0x28] sm:$0xff]  ;;  %v1630_v36 = vld [vmem:[#allocation2] sm:$0xff] }
 0x149   : > { %v1705_v31 = vpack.c.bf16 %v1575_v4, %v1572_v19  ;;  %v986_v44 = vsel %vm985_vm6, %v983_v8, %v980_v25  ;;  %v969_v57 = vadd.f32 1.0, %v2578_v18  ;;  %v972_v14 = vmul.f32 -0.5, %v2578_v18 }
 0x14a   : > { %v1378_v63 = vadd.f32 %v986_v44, %v610_v46  ;;  %2583 = vlog2.f32 %v942_v52  ;;  %vm994_vm9 = vcmp.lt.f32.partialorder %v993_v11, 0.0004427343  ;;  %v946_v56 = vadd.f32 1.0, %v945_v17  ;;  %v1473_v44 = vld [vmem:[%s3024_s11 + $0x18] sm:$0xff]  ;;  %v1640_v11 = vld [vmem:[#allocation2 + $0x50] sm:$0xff]  ;;  %v1650_v17 = vld [vmem:[#allocation2 + $0xa0] sm:$0xff] }
 0x14b   : > { %1739 = vmatpush1.bf16.xpose.msra.mxu0 %v1705_v31  ;;  %2585 = vlog2.f32 %v969_v57  ;;  %v948_v39 = vand.u32 2147483647, %v2576_v21  ;;  %v973_v34 = vadd.f32 1.0, %v972_v14  ;;  %v975_v30 = vand.u32 2147483647, %v2578_v18  ;;  %v513_v52 = vld [vmem:[%s3015_s20 + $0x18] sm:$0xff] }
 0x14c   : > { %v1426_v10 = vsel %vm658_vm7, %v3918_v53, %v1378_v63  ;;  %v611_v53 = vmax.f32 %v3966_v9, 0.0  ;;  %v947_v35 = vmul.f32 %v2576_v21, %v946_v56  ;;  %v606_v29 = vmax.f32 %v4003_v38, 0.0  ;;  %v1641_v57 = vld [vmem:[#allocation2 + $0x58] sm:$0xff]  ;;  %v1659_v14 = vld [vmem:[#allocation2 + $0xe8] sm:$0xff]  ;;  %v1646_v56 = vld [vmem:[#allocation2 + $0x80] sm:$0xff] }
 0x14d   : > { %v1522_v41 = vmul.f32 %v1474_v1, %v1426_v10  ;;  %vm949_vm12 = vcmp.lt.f32.partialorder %v948_v39, 0.0004427343  ;;  %v974_v8 = vmul.f32 %v2578_v18, %v973_v34  ;;  %v609_v19 = vmax.f32 %v4017_v16, 0.0  ;;  %v1647_v10 = vld [vmem:[#allocation2 + $0x88] sm:$0xff]  ;;  %v1665_v39 = vld [vmem:[#allocation2 + $0x118] sm:$0xff]  ;;  %v1668_v34 = vld [vmem:[#allocation2 + $0x130] sm:$0xff] }
 0x14e   : > { %vm976_vm13 = vcmp.lt.f32.partialorder %v975_v30, 0.0004427343 }
 0x14f   : > { %v1570_v62 = vadd.f32 %v1522_v41, %v514_v12  ;;  %v1644_v12 = vld [vmem:[#allocation2 + $0x70] sm:$0xff] }
 0x150   : > { %v2580_v42 = vpop.eup %2579  ;;  %v1686_v27 = vpack.c.bf16 %v1647_v10, %v1644_v12  ;;  %v1675_v12 = vld [vmem:[#allocation2 + $0x168] sm:$0xff] }
 0x151   : > { %v1703_v43 = vpack.c.bf16 %v1570_v62, %v1567_v24  ;;  %v2582_v59 = vpop.eup %2581  ;;  %v962_v22 = vmul.f32 0.6931472, %v2580_v42  ;;  %v1683_v24 = vpack.c.bf16 %v1641_v57, %v1638_v47  ;;  %v1637_v62 = vld [vmem:[#allocation2 + $0x38] sm:$0xff]  ;;  %v1672_v57 = vld [vmem:[#allocation2 + $0x150] sm:$0xff] }
 0x152   : > { %v989_v55 = vmul.f32 0.6931472, %v2582_v59  ;;  %v1682_v42 = vpack.c.bf16 %v1640_v11, %v1637_v62  ;;  %v1636_v59 = vld [vmem:[#allocation2 + $0x30] sm:$0xff]  ;;  %v1699_v10 = vpack.c.bf16 %v1675_v12, %v1672_v57 }
 0x153   : > { %1740 = vmatprep.subr.bf16.mxu0 %v1703_v43  ;;  %v968_v54 = vsel %vm967_vm8, %v965_v3, %v962_v22  ;;  %v1656_v3 = vld [vmem:[#allocation2 + $0xd0] sm:$0xff]  ;;  %v1643_v22 = vld [vmem:[#allocation2 + $0x68] sm:$0xff] }
 0x154   : > { %v995_v60 = vsel %vm994_vm9, %v992_v40, %v989_v55  ;;  %v1376_v51 = vadd.f32 %v968_v54, %v608_v58  ;;  %v1692_v40 = vpack.c.bf16 %v1659_v14, %v1656_v3  ;;  %v1662_v55 = vld [vmem:[#allocation2 + $0x100] sm:$0xff] }
 0x155   : > { %v1379_v48 = vadd.f32 %v995_v60, %v611_v53  ;;  %v1639_v53 = vld [vmem:[#allocation2 + $0x48] sm:$0xff] }
 0x156   : > { %v1424_v23 = vsel %vm656_vm10, %v3958_v20, %v1376_v51  ;;  %v1681_v54 = vpack.c.bf16 %v1639_v53, %v1636_v59  ;;  %v1671_v60 = vld [vmem:[#allocation2 + $0x148] sm:$0xff]  ;;  %v1685_v51 = vpack.c.bf16 %v1646_v56, %v1643_v22  ;;  %v1975_v53 = vld [vmem:[%s487_s16] sm:$0x1] }
 0x157   : > { %v2584_v37 = vpop.eup %2583  ;;  %v1427_v6 = vsel %vm659_vm11, %v3966_v9, %v1379_v48  ;;  %v1520_v0 = vmul.f32 %v1472_v5, %v1424_v23  ;;  %v1470_v9 = vld [vmem:[%s3024_s11] sm:$0xff]  ;;  %v1695_v5 = vpack.c.bf16 %v1665_v39, %v1662_v55  ;;  %v1698_v30 = vpack.c.bf16 %v1671_v60, %v1668_v34  ;;  %v1677_v23 = vld [vmem:[#allocation2 + $0x178] sm:$0xff]  ;;  %s2797_s11 = smov [#allocation10]  }
 0x158   : > { %v944_v15 = vmul.f32 0.6931472, %v2584_v37  ;;  %v2586_v28 = vpop.eup %2585  ;;  %v1523_v45 = vmul.f32 %v1475_v49, %v1427_v6  ;;  %v1642_v48 = vld [vmem:[#allocation2 + $0x60] sm:$0xff]  ;;  %v1645_v49 = vld [vmem:[#allocation2 + $0x78] sm:$0xff]  ;;  %v1652_v37 = vld [vmem:[#allocation2 + $0xb0] sm:$0xff]  ;;  %s2705_s17 = sshll.u32 %s2797_s11, 4  ;;  %s2706_s17 = int_to_ptr.vmem [resolvable:$false] %s2705_s17 }
 0x159   : > { %v1568_v46 = vadd.f32 %v1520_v0, %v512_v2  ;;  %v971_v7 = vmul.f32 0.6931472, %v2586_v28  ;;  %v1674_v2 = vld [vmem:[#allocation2 + $0x160] sm:$0xff]  ;;  %v1648_v0 = vld [vmem:[#allocation2 + $0x90] sm:$0xff]  ;;  %s2707_s22 = scalar_lea.vmem %s2706_s17, 4096  ;;  %p2708_p5 = scmp.lt.s32.totalorder %s4212_s14, %s2706_s17 }
 0x15a   : > { %v950_v20 = vsel %vm949_vm12, %v947_v35, %v944_v15  ;;  %v1571_v4 = vadd.f32 %v1523_v45, %v515_v61  ;;  %v1649_v35 = vld [vmem:[#allocation2 + $0x98] sm:$0xff]  ;;  %v1701_v6 = vpack.c.bf16 %v1677_v23, %v1674_v2  ;;  %v1651_v15 = vld [vmem:[#allocation2 + $0xa8] sm:$0xff]  ;;  %v1658_v28 = vld [vmem:[#allocation2 + $0xe0] sm:$0xff]  ;;  %p2709_p0 = scmp.lt.s32.totalorder %s2707_s22, %s2701_s9 }
 0x15b   : > { %v1374_v25 = vadd.f32 %v950_v20, %v606_v29  ;;  %v977_v50 = vsel %vm976_vm13, %v974_v8, %v971_v7  ;;  %v1684_v29 = vpack.c.bf16 %v1645_v49, %v1642_v48  ;;  %v1688_v61 = vpack.c.bf16 %v1652_v37, %v1649_v35  ;;  %v1655_v8 = vld [vmem:[#allocation2 + $0xc8] sm:$0xff]  ;;  %v1657_v20 = vld [vmem:[#allocation2 + $0xd8] sm:$0xff]  ;;  %v1955_v39 = vld [vmem:[%s481_s19] sm:$0x1] }
 0x15c   : > { %v1704_v21 = vpack.c.bf16 %v1571_v4, %v1568_v46  ;;  %v1377_v18 = vadd.f32 %v977_v50, %v609_v19  ;;  %v1687_v45 = vpack.c.bf16 %v1651_v15, %v1648_v0  ;;  %v1691_v19 = vpack.c.bf16 %v1658_v28, %v1655_v8  ;;  %v1654_v46 = vld [vmem:[#allocation2 + $0xc0] sm:$0xff]  ;;  %v1661_v7 = vld [vmem:[#allocation2 + $0xf8] sm:$0xff]  ;;  %v1664_v4 = vld [vmem:[#allocation2 + $0x110] sm:$0xff]  ;;  %p2710_p4 = por %p2709_p0, %p2708_p5 }
 0x15d   : > { %v1422_v31 = vsel %vm654_vm14, %v4003_v38, %v1374_v25  ;;  %v1633_v38 = vld [vmem:[#allocation2 + $0x18] sm:$0xff]  ;;  %v1690_v25 = vpack.c.bf16 %v1657_v20, %v1654_v46  ;;  %v1660_v50 = vld [vmem:[#allocation2 + $0xf0] sm:$0xff] }
 0x15e   : > { %v1518_v32 = vmul.f32 %v1470_v9, %v1422_v31  ;;  %2281 = vmatprep.subr.bf16.mxu1 %v1704_v21  ;;  %v1425_v26 = vsel %vm657_vm15, %v4017_v16, %v1377_v18  ;;  %v1653_v16 = vld [vmem:[#allocation2 + $0xb8] sm:$0xff]  ;;  %v1678_v43 = vpack.c.bf16 %v1633_v38, %v1630_v36  ;;  %v1694_v9 = vpack.c.bf16 %v1664_v4, %v1661_v7  ;;  %v1670_v18 = vld [vmem:[#allocation2 + $0x140] sm:$0xff]  ;;  %p2711_p1 = pnand %p2710_p4, %p2704_p10 }
 0x15f   : > { %v1521_v63 = vmul.f32 %v1473_v44, %v1425_v26  ;;  %2282 = vmatpush3.bf16.xpose.msra.mxu1 %v1704_v21  ;;  %v1689_v58 = vpack.c.bf16 %v1653_v16, %v1650_v17  ;;  %v1663_v21 = vld [vmem:[#allocation2 + $0x108] sm:$0xff]  ;;  %v1673_v26 = vld [vmem:[#allocation2 + $0x158] sm:$0xff] }
 0x160   : > { %v1566_v1 = vadd.f32 %v1518_v32, %v510_v33  ;;  %v1667_v33 = vld [vmem:[#allocation2 + $0x128] sm:$0xff]  ;;  %v1693_v31 = vpack.c.bf16 %v1663_v21, %v1660_v50  ;;  %v1666_v32 = vld [vmem:[#allocation2 + $0x120] sm:$0xff] }
 0x161   : > { %v1569_v41 = vadd.f32 %v1521_v63, %v513_v52  ;;  %v1697_v44 = vpack.c.bf16 %v1670_v18, %v1667_v33  ;;  %v1669_v52 = vld [vmem:[#allocation2 + $0x138] sm:$0xff]  ;;  %v1676_v63 = vld [vmem:[#allocation2 + $0x170] sm:$0xff] }
 0x162   : > { %v1700_v47 = vpack.c.bf16 %v1676_v63, %v1673_v26 }
 0x163   : > { %v1702_v13 = vpack.c.bf16 %v1569_v41, %v1566_v1  ;;  %v1696_v1 = vpack.c.bf16 %v1669_v52, %v1666_v32  ;;  %v1956_v41 = vld [vmem:[%s484_s29] sm:$0x1] }
 0x164   : > { %v1957_v14 = vmax.f32 %v1956_v41, 0.0  ;;  %vm1958_vm1 = vcmp.ne.f32.partialorder %v1956_v41, %v1956_v41 }
 0x165   : > { %1741 = vmatpush1.bf16.xpose.msra.mxu0 %v1702_v13 }
 0x166   : > { %2284 = vmatmul.mubr.bf16.vlgmr.msra.gmra.mxu1 %v1683_v24  ;;  %v1960_v24 = vand.u32 2147483647, %v1956_v41 }
 0x167   : > { %2287 = vmatprep.mubr.bf16.mxu1 %v1686_v27 }
 0x168   : > { %v1961_v13 = vsub.f32 0.0, %v1960_v24 }
 0x16a   : > { %v1962_v27 = vmul.f32 1.442695, %v1961_v13 }
 0x16c   : > { %1759 = vmatmul.mubr.bf16.vlgmr.msra.gmra.mxu0 %v1678_v43  ;;  %2587 = vpow2.f32 %v1962_v27 }
 0x16d   : > { %1766 = vmatprep.mubr.bf16.mxu0 %v1682_v42 }
 0x16e   : > { %2288 = vmatmul.mubr.bf16.gmra.mxu1 %v1689_v58 }
 0x16f   : > { %2291 = vmatprep.mubr.bf16.mxu1 %v1692_v40  ;;  %v1995_v40 = vlaneseq }
 0x171   : > { %v1996_v56 = vshrl.u32 %v1995_v40, 7 }
 0x173   : > { %v1997_v60 = vsub.s32 0, %v1996_v56 }
 0x174   : > { %1767 = vmatmul.mubr.bf16.gmra.mxu0 %v1681_v54 }
 0x175   : > { %1774 = vmatprep.mubr.bf16.mxu0 %v1685_v51 }
 0x176   : > { %2292 = vmatmul.mubr.bf16.gmra.mxu1 %v1695_v5 }
 0x177   : > { %2295 = vmatprep.mubr.bf16.mxu1 %v1698_v30 }
 0x179   : > { %v2588_v36 = vpop.eup %2587 }
 0x17a   : > { %v1964_v38 = vadd.f32 1.0, %v2588_v36  ;;  %v1967_v62 = vmul.f32 -0.5, %v2588_v36  ;;  %v1970_v16 = vand.u32 2147483647, %v2588_v36 }
 0x17c   : > { %1775 = vmatmul.mubr.bf16.gmra.mxu0 %v1684_v29  ;;  %2589 = vlog2.f32 %v1964_v38  ;;  %v1968_v11 = vadd.f32 1.0, %v1967_v62  ;;  %vm1971_vm0 = vcmp.lt.f32.partialorder %v1970_v16, 0.0004427343 }
 0x17d   : > { %1782 = vmatprep.mubr.bf16.mxu0 %v1688_v61 }
 0x17e   : > { %2296 = vmatmul.mubr.bf16.gmra.mxu1 %v1701_v6  ;;  %v1969_v3 = vmul.f32 %v2588_v36, %v1968_v11 }
 0x184   : > { %1783 = vmatmul.mubr.bf16.gmra.mxu0 %v1687_v45 }
 0x185   : > { %1790 = vmatprep.mubr.bf16.mxu0 %v1691_v19 }
 0x189   : > { %v2590_v17 = vpop.eup %2589 }
 0x18a   : > { %v1966_v43 = vmul.f32 0.6931472, %v2590_v17 }
 0x18c   : > { %1791 = vmatmul.mubr.bf16.gmra.mxu0 %v1690_v25  ;;  %v1972_v42 = vsel %vm1971_vm0, %v1969_v3, %v1966_v43 }
 0x18d   : > { %1798 = vmatprep.mubr.bf16.mxu0 %v1694_v9  ;;  %v1973_v58 = vadd.f32 %v1972_v42, %v1957_v14 }
 0x18f   : > { %v1974_v59 = vsel %vm1958_vm1, %v1956_v41, %v1973_v58 }
 0x190   : > { %v1976_v22 = vmul.f32 %v1975_v53, %v1974_v59 }
 0x192   : > { %v1977_v34 = vadd.f32 %v1976_v22, %v1955_v39 }
 0x194   : > { %1799 = vmatmul.mubr.bf16.gmra.mxu0 %v1693_v31  ;;  %v4171_v48 = vrot.slane %v1977_v34, %v1997_v60 }
 0x195   : > { %1806 = vmatprep.mubr.bf16.mxu0 %v1697_v44 }
 0x19c   : > { %1807 = vmatmul.mubr.bf16.gmra.mxu0 %v1696_v1 }
 0x19d   : > { %1814 = vmatprep.mubr.bf16.mxu0 %v1700_v47 }
 0x1a4   : > { %1815 = vmatmul.mubr.bf16.gmra.mxu0 %v1699_v10 }
 0x226   : > { %v2285_v55 = vpop.f32.mrf.mxu1 }
 0x228   : > { %v1857_v54 = vpop.f32.mrf.mxu1 }
 0x22a   : > { %v2286_v51 = vpop.f32.mrf.mxu1 }
 0x22c   : > { %v1760_v5 = vpop.f32.mrf.mxu0  ;;  %v1860_v35 = vpop.f32.mrf.mxu1 }
 0x22d   : > { %v1858_v30 = vadd.f32 %v1857_v54, %v1760_v5 }
 0x22e   : > { %v1762_v49 = vpop.f32.mrf.mxu0  ;;  %v2289_v61 = vpop.f32.mrf.mxu1 }
 0x22f   : > { %v2000_v2 = vadd.f32 %v4171_v48, %v1858_v30 }
 0x230   : > { %v1763_v37 = vpop.f32.mrf.mxu0  ;;  %v1873_v28 = vpop.f32.mrf.mxu1 }
 0x231   : > { %v1861_v23 = vadd.f32 %v1860_v35, %v1763_v37  ;;  %2016 = vst [vmem:[%s4174_s1] sm:$0xff] %v2000_v2 }
 0x232   : > { %v1765_v29 = vpop.f32.mrf.mxu0  ;;  %v2290_v7 = vpop.f32.mrf.mxu1 }
 0x233   : > { %v2001_v0 = vadd.f32 %v4171_v48, %v1861_v23 }
 0x234   : > { %v1768_v6 = vpop.f32.mrf.mxu0  ;;  %v1876_v21 = vpop.f32.mrf.mxu1 }
 0x235   : > { %v1866_v15 = vadd.f32 %v2285_v55, %v1768_v6  ;;  %2017 = vst [vmem:[%s4174_s1 + $0x8] sm:$0xff] %v2001_v0 }
 0x236   : > { %v1770_v8 = vpop.f32.mrf.mxu0  ;;  %v2293_v32 = vpop.f32.mrf.mxu1 }
 0x237   : > { %v2002_v19 = vadd.f32 %v4171_v48, %v1866_v15 }
 0x238   : > { %v1771_v45 = vpop.f32.mrf.mxu0  ;;  %v1889_v47 = vpop.f32.mrf.mxu1 }
 0x239   : > { %v1869_v46 = vadd.f32 %v2286_v51, %v1771_v45  ;;  %2018 = vst [vmem:[%s4174_s1 + $0x10] sm:$0xff] %v2002_v19 }
 0x23a   : > { %v1773_v20 = vpop.f32.mrf.mxu0  ;;  %v2294_v24 = vpop.f32.mrf.mxu1 }
 0x23b   : > { %v2003_v25 = vadd.f32 %v4171_v48, %v1869_v46 }
 0x23c   : > { %v1776_v4 = vpop.f32.mrf.mxu0  ;;  %v1892_v62 = vpop.f32.mrf.mxu1 }
 0x23d   : > { %v1874_v9 = vadd.f32 %v1873_v28, %v1776_v4  ;;  %2019 = vst [vmem:[%s4174_s1 + $0x18] sm:$0xff] %v2003_v25 }
 0x23e   : > { %v1778_v50 = vpop.f32.mrf.mxu0  ;;  %v2297_v3 = vpop.f32.mrf.mxu1 }
 0x23f   : > { %v2004_v18 = vadd.f32 %v4171_v48, %v1874_v9 }
 0x240   : > { %v1779_v33 = vpop.f32.mrf.mxu0  ;;  %v1905_v59 = vpop.f32.mrf.mxu1 }
 0x241   : > { %v1877_v31 = vadd.f32 %v1876_v21, %v1779_v33  ;;  %2020 = vst [vmem:[%s4174_s1 + $0x20] sm:$0xff] %v2004_v18 }
 0x242   : > { %v1781_v44 = vpop.f32.mrf.mxu0  ;;  %v2298_v39 = vpop.f32.mrf.mxu1 }
 0x243   : > { %v2005_v26 = vadd.f32 %v4171_v48, %v1877_v31 }
 0x244   : > { %v1784_v52 = vpop.f32.mrf.mxu0  ;;  %v1908_v5 = vpop.f32.mrf.mxu1 }
 0x245   : > { %v1882_v63 = vadd.f32 %v2289_v61, %v1784_v52  ;;  %2021 = vst [vmem:[%s4174_s1 + $0x28] sm:$0xff] %v2005_v26 }
 0x246   : > { %v1786_v1 = vpop.f32.mrf.mxu0 }
 0x247   : > { %v2006_v12 = vadd.f32 %v4171_v48, %v1882_v63 }
 0x248   : > { %v1787_v57 = vpop.f32.mrf.mxu0 }
 0x249   : > { %v1885_v10 = vadd.f32 %v2290_v7, %v1787_v57  ;;  %2022 = vst [vmem:[%s4174_s1 + $0x30] sm:$0xff] %v2006_v12 }
 0x24a   : > { %v1789_v41 = vpop.f32.mrf.mxu0 }
 0x24b   : > { %v2007_v27 = vadd.f32 %v4171_v48, %v1885_v10 }
 0x24c   : > { %v1792_v13 = vpop.f32.mrf.mxu0 }
 0x24d   : > { %v1890_v36 = vadd.f32 %v1889_v47, %v1792_v13  ;;  %2023 = vst [vmem:[%s4174_s1 + $0x38] sm:$0xff] %v2007_v27 }
 0x24e   : > { %v1794_v38 = vpop.f32.mrf.mxu0 }
 0x24f   : > { %v2008_v17 = vadd.f32 %v4171_v48, %v1890_v36 }
 0x250   : > { %v1795_v11 = vpop.f32.mrf.mxu0 }
 0x251   : > { %v1893_v16 = vadd.f32 %v1892_v62, %v1795_v11  ;;  %2024 = vst [vmem:[%s4174_s1 + $0x40] sm:$0xff] %v2008_v17 }
 0x252   : > { %v1797_v43 = vpop.f32.mrf.mxu0 }
 0x253   : > { %v2009_v42 = vadd.f32 %v4171_v48, %v1893_v16 }
 0x254   : > { %v1800_v14 = vpop.f32.mrf.mxu0 }
 0x255   : > { %v1898_v58 = vadd.f32 %v2293_v32, %v1800_v14  ;;  %2025 = vst [vmem:[%s4174_s1 + $0x48] sm:$0xff] %v2009_v42 }
 0x256   : > { %v1802_v40 = vpop.f32.mrf.mxu0 }
 0x257   : > { %v2010_v22 = vadd.f32 %v4171_v48, %v1898_v58 }
 0x258   : > { %v1803_v53 = vpop.f32.mrf.mxu0 }
 0x259   : > { %v1901_v56 = vadd.f32 %v2294_v24, %v1803_v53  ;;  %2026 = vst [vmem:[%s4174_s1 + $0x50] sm:$0xff] %v2010_v22 }
 0x25a   : > { %v1805_v55 = vpop.f32.mrf.mxu0 }
 0x25b   : > { %v2011_v34 = vadd.f32 %v4171_v48, %v1901_v56 }
 0x25c   : > { %v1808_v54 = vpop.f32.mrf.mxu0 }
 0x25d   : > { %v1906_v60 = vadd.f32 %v1905_v59, %v1808_v54  ;;  %2027 = vst [vmem:[%s4174_s1 + $0x58] sm:$0xff] %v2011_v34 }
 0x25e   : > { %v1810_v51 = vpop.f32.mrf.mxu0 }
 0x25f   : > { %v2012_v49 = vadd.f32 %v4171_v48, %v1906_v60 }
 0x260   : > { %v1811_v30 = vpop.f32.mrf.mxu0 }
 0x261   : > { %v1909_v35 = vadd.f32 %v1908_v5, %v1811_v30  ;;  %2028 = vst [vmem:[%s4174_s1 + $0x60] sm:$0xff] %v2012_v49 }
 0x262   : > { %v1813_v37 = vpop.f32.mrf.mxu0 }
 0x263   : > { %v2013_v23 = vadd.f32 %v4171_v48, %v1909_v35 }
 0x264   : > { %v1816_v2 = vpop.f32.mrf.mxu0 }
 0x265   : > { %v1914_v29 = vadd.f32 %v2297_v3, %v1816_v2  ;;  %2029 = vst [vmem:[%s4174_s1 + $0x68] sm:$0xff] %v2013_v23 }
 0x266   : > { %v1818_v61 = vpop.f32.mrf.mxu0 }
 0x267   : > { %v2014_v0 = vadd.f32 %v4171_v48, %v1914_v29 }
 0x268   : > { %v1819_v6 = vpop.f32.mrf.mxu0 }
 0x269   : > { %v1917_v15 = vadd.f32 %v2298_v39, %v1819_v6  ;;  %2030 = vst [vmem:[%s4174_s1 + $0x70] sm:$0xff] %v2014_v0 }
 0x26a   : > { %v1821_v8 = vpop.f32.mrf.mxu0 }
 0x26b   : > { %v2015_v28 = vadd.f32 %v4171_v48, %v1917_v15 }
 0x26d   : > { %2031 = vst [vmem:[%s4174_s1 + $0x78] sm:$0xff] %v2015_v28 }
 0x26e   : > { %2714 = shalt.err (!%p2711_p1)
}
 0x26f   : > { %s2715_s10 = scalar_lea.hbm %s4210_s23, 2048  ;;  %s2719_s21 = scalar_lea.hbm %s4269_s7, 4096 }
 0x270   : > { %p2716_p3 = scmp.ne.s32.totalorder %s4210_s23, %s2715_s10  ;;  %p2720_p8 = scmp.lt.s32.totalorder %s4210_s23, %s4269_s7 }
 0x271   : > { %p2721_p12 = scmp.lt.s32.totalorder %s2719_s21, %s2715_s10 }
 0x272   : > { %p2717_p6 = pnand %p2716_p3, %p4388_p2 }
 0x273   : > { %p2722_p7 = por %p2721_p12, %p2720_p8 }
 0x274   : > { %p2718_p13 = pneg %p2717_p6 }
 0x276   : > { %p2723_p11 = pnand %p2722_p7, %p2718_p13 }
 0x278   : > { %2726 = shalt.err (!%p2723_p11)
}
 0x279   : > { %s2798_s30 = smov 128   ;;  %s2799_s19 = smov 256  }
 0x27a   : > { %s2800_s28 = smov 8  }
 0x27b   : > { %2316 = dma.vmem_to_hbm [thread:$0]  (%p4388_p2), %s4212_s14, 2048, %s4210_s23, %s2033_s27, %s2798_s30, %s2799_s19, %s2800_s28  }
 0x27c PF: > { %s4389_s1 = sld [smem:[#allocation19_spill]]  ;;  %s2063_s15 = sand.u32 1, %s2769_s24  }
 0x27d   : > { %s4390_s2 = sld [smem:[#allocation16_spill]]  ;;  %s2064_s20 = scalar_lea.sflag [#allocation4], %s2063_s15 }
 0x282   : > { %p4391_p9 = scmp.ne.s32.totalorder %s4389_s1, 0 }
 0x283   : > { %p4392_p10 = scmp.ge.s32.totalorder %s4390_s2, 2 }
 0x285   : > { %p2333_p5 = pnand %p4392_p10, %p4391_p9 }
 0x287   : > { %p2334_p0 = pneg %p2333_p5 }
 0x289   : > { %2764 = dma.done.wait (%p2334_p0), %s2064_s20, 2048  }
 0x28a   : > { %2766 = vsyncadd (%p2334_p0), %s2064_s20, 4294965248  ;;  %s27_s29 = sadd.s32 1, %s4390_s2   ;;  %s4393_s18 = sld [smem:[#allocation18_spill]] }
 0x28b   : > { %p24_p4 = scmp.ge.s32.totalorder %s27_s29, 4   ;;  %s4394_s27 = sld [smem:[#allocation15_spill]] }
 0x28c   : > { %s4395_s28 = sld [smem:[#allocation17_spill]]  ;;  %s4396_s24 = smov %s2773_s25 }
 0x28d   : > { %s4397_s25 = smov %s2777_s26  ;;  %26 = sbr.rel (!%p24_p4) target bundleno = 12 (0xc), region = 140 }
 0x290   : > { %s4398_s26 = smov %s4393_s18 }
 0x292   :  { %2069 = vsyncpa [#allocation3], 1 }
 0x293   :  { %2071 = vsyncpa [#allocation3 + $0x1], 1 }
 0x294   :  { %2072 = vsyncpa [#allocation6], 1 }
 0x295   :  { %2074 = vsyncpa [#allocation6 + $0x1], 1 }
 0x296   :  { %2075 = vsyncpa [#allocation9], 1 }
 0x297   :  { %2077 = vsyncpa [#allocation9 + $0x1], 1 }
 0x298   :  { %2078 = vsyncpa [#allocation4], 1 }
 0x299   :  { %2080 = vsyncpa [#allocation4 + $0x1], 1 }

</bundles_post_ra>
